<compile_context>
chip_gen: v5e
topology: v5e:2x2
jax: 0.10.0
libtpu: 0.0.40
codegen_flags: <defaults>
</compile_context>

<pallas_src>
import functools

import jax
import jax.numpy as jnp
from jax import lax
from jax.experimental import pallas as pl
from jax.experimental.pallas import tpu as pltpu


def _round_up(x, m):
    return (x + m - 1) // m * m


def _lstm_classifier_kernel(embeds_ref, h0_ref, c0_ref,
                            wih_ref, whh_ref, b_ref,
                            fcw_ref, fcb_ref,
                            logps_ref, h_out_ref, c_out_ref,
                            xproj_ref):
    """LSTM over time + FC + log-softmax, fully lane/sublane padded.

    embeds_ref : (T*Bp, E)    bf16  flattened time-major, batch padded to Bp
    h0/c0      : (Bp, Hp)     f32   hidden padded to Hp (multiple of 128)
    wih_ref    : (E, 4*Hp)    bf16  each gate block zero-padded to Hp lanes
    whh_ref    : (Hp, 4*Hp)   bf16
    b_ref      : (1, 4*Hp)    f32   b_ih + b_hh, gate-padded with zeros
    fcw_ref    : (Hp, Op)     bf16  output padded to Op (multiple of 128)
    fcb_ref    : (1, Op)      f32   padded entries = -1e30 (masked from softmax)
    logps_ref  : (Bp, Op)     f32
    h_out/c_out: (Bp, Hp)     f32
    xproj_ref  : (T*Bp, 4*Hp) f32   VMEM scratch: precomputed input projection
    """
    Bp, Hp = h0_ref.shape
    T = embeds_ref.shape[0] // Bp

    # One large MXU matmul for all timesteps; bias folded in here so the serial
    # loop only carries the h-dependent matmul.
    xproj_ref[...] = (
        jnp.dot(embeds_ref[...], wih_ref[...], preferred_element_type=jnp.float32)
        + b_ref[...])

    whh = whh_ref[...]

    def step(t, carry):
        h, c = carry
        row = pl.multiple_of(t * Bp, Bp)
        gates = xproj_ref[pl.ds(row, Bp), :] + jnp.dot(
            h.astype(whh.dtype), whh, preferred_element_type=jnp.float32)
        # PyTorch gate order i, f, g, o — each block lane-aligned at k*Hp.
        i_g = jax.nn.sigmoid(gates[:, 0 * Hp:1 * Hp])
        f_g = jax.nn.sigmoid(gates[:, 1 * Hp:2 * Hp])
        g_g = jnp.tanh(gates[:, 2 * Hp:3 * Hp])
        o_g = jax.nn.sigmoid(gates[:, 3 * Hp:4 * Hp])
        c_new = f_g * c + i_g * g_g
        h_new = o_g * jnp.tanh(c_new)
        return h_new, c_new

    # T is small & static: fully unroll for cross-iteration scheduling.
    h, c = lax.fori_loop(0, T, step, (h0_ref[...], c0_ref[...]), unroll=True)

    h_out_ref[...] = h
    c_out_ref[...] = c

    # Dropout is identity in eval mode. FC + numerically-stable log-softmax.
    out = (jnp.dot(h.astype(fcw_ref.dtype), fcw_ref[...],
                   preferred_element_type=jnp.float32) + fcb_ref[...])   # (Bp, Op)
    m = jnp.max(out, axis=1, keepdims=True)
    z = out - m
    lse = jnp.log(jnp.sum(jnp.exp(z), axis=1, keepdims=True))
    logps_ref[...] = z - lse


def text_classifier_forward(token_ids, hidden_state, params):
    """Mirrors TextClassifier.forward.

    token_ids    : (T, B) int32 (batch_first=False).
    hidden_state : (h, c), each (1, B, H).
    Returns (logps (B, O), (h, c) each (1, B, H)).
    """
    h0, c0 = hidden_state
    T, B = token_ids.shape
    H = params["lstm_size"]
    O = params["output_size"]
    Hp = params["w_hh_t"].shape[0]
    Op = params["fc_w_t"].shape[1]
    Bp = _round_up(B, 8)

    # Embedding gather (plain-JAX glue, not the hot path).
    # TODO(synk): for non-toy T*B*E, fuse the gather via scalar-prefetch /
    # in-kernel DMA and stream embeds in T-chunks to stay under v7x's 64 MiB VMEM.
    embeds = jnp.take(params["embedding"], token_ids, axis=0)          # (T, B, E)
    embeds = embeds.astype(jnp.bfloat16)
    embeds = jnp.pad(embeds, ((0, 0), (0, Bp - B), (0, 0)))            # (T, Bp, E)
    embeds = embeds.reshape(T * Bp, -1)                                # (T*Bp, E)

    h0p = jnp.pad(h0[0].astype(jnp.float32), ((0, Bp - B), (0, Hp - H)))
    c0p = jnp.pad(c0[0].astype(jnp.float32), ((0, Bp - B), (0, Hp - H)))

    vmem = pl.BlockSpec(memory_space=pltpu.MemorySpace.VMEM)

    logps_p, h_out_p, c_out_p = pl.pallas_call(
        _lstm_classifier_kernel,
        out_shape=(
            jax.ShapeDtypeStruct((Bp, Op), jnp.float32),
            jax.ShapeDtypeStruct((Bp, Hp), jnp.float32),
            jax.ShapeDtypeStruct((Bp, Hp), jnp.float32),
        ),
        in_specs=[vmem] * 8,
        out_specs=(vmem, vmem, vmem),
        scratch_shapes=[pltpu.VMEM((T * Bp, 4 * Hp), jnp.float32)],
    )(
        embeds, h0p, c0p,
        params["w_ih_t"], params["w_hh_t"], params["b_gates"],
        params["fc_w_t"], params["fc_b"],
    )

    logps = logps_p[:B, :O]
    h_out = h_out_p[:B, :H][None, :, :]
    c_out = c_out_p[:B, :H][None, :, :]
    return logps, (h_out, c_out)


def init_params(key, vocab_size, embed_size, lstm_size, output_size):
    """Synthetic params with nn.Module-equivalent shapes, pre-padded for the kernel."""
    ks = jax.random.split(key, 7)
    H, O = lstm_size, output_size
    Hp = _round_up(H, 128)
    Op = _round_up(O, 128)
    bound = 1.0 / jnp.sqrt(jnp.float32(H))

    embedding = jax.random.normal(ks[0], (vocab_size, embed_size), jnp.float32)
    w_ih = jax.random.uniform(ks[1], (4 * H, embed_size), jnp.float32, -bound, bound)
    w_hh = jax.random.uniform(ks[2], (4 * H, H), jnp.float32, -bound, bound)
    b_ih = jax.random.uniform(ks[3], (4 * H,), jnp.float32, -bound, bound)
    b_hh = jax.random.uniform(ks[4], (4 * H,), jnp.float32, -bound, bound)
    fc_w = jax.random.uniform(ks[5], (O, H), jnp.float32, -bound, bound)
    fc_b = jax.random.uniform(ks[6], (O,), jnp.float32, -bound, bound)

    def pad_gate_cols(w_t):  # (in, 4H) -> (in, 4Hp), each gate block -> Hp lanes
        inn = w_t.shape[0]
        return jnp.pad(w_t.reshape(inn, 4, H),
                       ((0, 0), (0, 0), (0, Hp - H))).reshape(inn, 4 * Hp)

    w_ih_t = pad_gate_cols(w_ih.T)                                     # (E, 4Hp)
    w_hh_t = jnp.pad(pad_gate_cols(w_hh.T), ((0, Hp - H), (0, 0)))     # (Hp, 4Hp)
    b_gates = jnp.pad((b_ih + b_hh).reshape(4, H),
                      ((0, 0), (0, Hp - H))).reshape(1, 4 * Hp)        # (1, 4Hp)
    fc_w_t = jnp.pad(fc_w.T, ((0, Hp - H), (0, Op - O)))               # (Hp, Op)
    # Padded output columns get -1e30 so they vanish under log-softmax.
    fc_b_p = jnp.pad(fc_b, (0, Op - O), constant_values=-1e30)[None, :]  # (1, Op)

    return {
        "embedding": embedding,
        "w_ih_t": w_ih_t.astype(jnp.bfloat16),
        "w_hh_t": w_hh_t.astype(jnp.bfloat16),
        "b_gates": b_gates.astype(jnp.float32),
        "fc_w_t": fc_w_t.astype(jnp.bfloat16),
        "fc_b": fc_b_p.astype(jnp.float32),
        "lstm_size": H,
        "output_size": O,
    }


if __name__ == "__main__":
    vocab_size, embed_size, lstm_size, output_size = 50, 32, 64, 8
    seq_len, batch = 8, 4

    key = jax.random.PRNGKey(0)
    k_tok, k_par = jax.random.split(key)

    params = init_params(k_par, vocab_size, embed_size, lstm_size, output_size)
    token_ids = jax.random.randint(k_tok, (seq_len, batch), 0, vocab_size, jnp.int32)

    # init_hidden(batch) equivalent: zeros of shape (lstm_layers, B, H).
    h0 = jnp.zeros((1, batch, lstm_size), jnp.float32)
    c0 = jnp.zeros((1, batch, lstm_size), jnp.float32)

    fwd = jax.jit(functools.partial(text_classifier_forward, params=params))
    logps, (h_out, c_out) = fwd(token_ids, (h0, c0))
    jax.block_until_ready((logps, h_out, c_out))

    assert logps.shape == (batch, output_size)
    assert h_out.shape == (1, batch, lstm_size) and c_out.shape == (1, batch, lstm_size)
    # log-softmax rows should exp-sum to 1.
    assert bool(jnp.allclose(jnp.sum(jnp.exp(logps), axis=1), 1.0, atol=1e-5))

    print("KERNEL_OK")
</pallas_src>

<mosaic_0001>
module attributes {stable_mosaic.version = 11 : i64} {
  func.func @_lstm_classifier_kernel(%arg0: memref<64x32xbf16, #tpu.memory_space<vmem>>, %arg1: memref<8x128xf32, #tpu.memory_space<vmem>>, %arg2: memref<8x128xf32, #tpu.memory_space<vmem>>, %arg3: memref<32x512xbf16, #tpu.memory_space<vmem>>, %arg4: memref<128x512xbf16, #tpu.memory_space<vmem>>, %arg5: memref<1x512xf32, #tpu.memory_space<vmem>>, %arg6: memref<128x128xbf16, #tpu.memory_space<vmem>>, %arg7: memref<1x128xf32, #tpu.memory_space<vmem>>, %arg8: memref<8x128xf32, #tpu.memory_space<vmem>>, %arg9: memref<8x128xf32, #tpu.memory_space<vmem>>, %arg10: memref<8x128xf32, #tpu.memory_space<vmem>>, %arg11: memref<64x512xf32, #tpu.memory_space<vmem>>) attributes {dimension_semantics = [], scalar_prefetch = 0 : i64, scratch_operands = 1 : i64, tpu.core_type = #tpu.core_type<tc>} {
    %c0 = arith.constant 0 : index
    %c0_0 = arith.constant 0 : index
    %0 = vector.load %arg0[%c0, %c0_0] : memref<64x32xbf16, #tpu.memory_space<vmem>>, vector<64x32xbf16>
    %c0_1 = arith.constant 0 : index
    %c0_2 = arith.constant 0 : index
    %1 = vector.load %arg3[%c0_1, %c0_2] : memref<32x512xbf16, #tpu.memory_space<vmem>>, vector<32x512xbf16>
    %cst = arith.constant dense<0.000000e+00> : vector<64x512xf32>
    %2 = tpu.matmul %0, %1, %cst {dimension_numbers = #tpu.dot_dimension_numbers<[1], [0], [0], [1], [0, 0, 1, 1], [], []>} : vector<64x32xbf16>, vector<32x512xbf16>, vector<64x512xf32> -> vector<64x512xf32>
    %c0_3 = arith.constant 0 : index
    %c0_4 = arith.constant 0 : index
    %3 = vector.load %arg5[%c0_3, %c0_4] : memref<1x512xf32, #tpu.memory_space<vmem>>, vector<1x512xf32>
    %4 = vector.broadcast %3 : vector<1x512xf32> to vector<64x512xf32>
    %5 = arith.addf %2, %4 : vector<64x512xf32>
    %c0_5 = arith.constant 0 : index
    %c0_6 = arith.constant 0 : index
    %6 = vector.load %arg11[%c0_5, %c0_6] : memref<64x512xf32, #tpu.memory_space<vmem>>, vector<64x512xf32>
    tpu.vector_store %arg11[%c0_5, %c0_6], %5 {strides = array<i32>} : memref<64x512xf32, #tpu.memory_space<vmem>>, vector<64x512xf32>,
    %c0_7 = arith.constant 0 : index
    %c0_8 = arith.constant 0 : index
    %7 = vector.load %arg4[%c0_7, %c0_8] : memref<128x512xbf16, #tpu.memory_space<vmem>>, vector<128x512xbf16>
    %c0_9 = arith.constant 0 : index
    %c0_10 = arith.constant 0 : index
    %8 = vector.load %arg1[%c0_9, %c0_10] : memref<8x128xf32, #tpu.memory_space<vmem>>, vector<8x128xf32>
    %c0_11 = arith.constant 0 : index
    %c0_12 = arith.constant 0 : index
    %9 = vector.load %arg2[%c0_11, %c0_12] : memref<8x128xf32, #tpu.memory_space<vmem>>, vector<8x128xf32>
    %c0_i32 = arith.constant 0 : i32
    %c8_i32 = arith.constant 8 : i32
    %10 = arith.muli %c0_i32, %c8_i32 : i32
    %11 = tpu.assume_multiple %10, 8 : i32
    %12 = arith.index_cast %11 : i32 to index
    %c0_13 = arith.constant 0 : index
    %13 = vector.load %arg11[%12, %c0_13] : memref<64x512xf32, #tpu.memory_space<vmem>>, vector<8x512xf32>
    %14 = arith.truncf %8 : vector<8x128xf32> to vector<8x128xbf16>
    %cst_14 = arith.constant dense<0.000000e+00> : vector<8x512xf32>
    %15 = tpu.matmul %14, %7, %cst_14 {dimension_numbers = #tpu.dot_dimension_numbers<[1], [0], [0], [1], [0, 0, 1, 1], [], []>} : vector<8x128xbf16>, vector<128x512xbf16>, vector<8x512xf32> -> vector<8x512xf32>
    %16 = arith.addf %13, %15 : vector<8x512xf32>
    %17 = vector.extract_strided_slice %16 {offsets = [0, 0], sizes = [8, 128], strides = [1, 1]} : vector<8x512xf32> to vector<8x128xf32>
    %18 = arith.negf %17 : vector<8x128xf32>
    %19 = math.exp %18 : vector<8x128xf32>
    %cst_15 = arith.constant 1.000000e+00 : f32
    %20 = vector.broadcast %cst_15 : f32 to vector<8x128xf32>
    %21 = arith.addf %20, %19 : vector<8x128xf32>
    %22 = arith.divf %20, %21 : vector<8x128xf32>
    %23 = vector.extract_strided_slice %16 {offsets = [0, 128], sizes = [8, 128], strides = [1, 1]} : vector<8x512xf32> to vector<8x128xf32>
    %24 = arith.negf %23 : vector<8x128xf32>
    %25 = math.exp %24 : vector<8x128xf32>
    %cst_16 = arith.constant 1.000000e+00 : f32
    %26 = vector.broadcast %cst_16 : f32 to vector<8x128xf32>
    %27 = arith.addf %26, %25 : vector<8x128xf32>
    %28 = arith.divf %26, %27 : vector<8x128xf32>
    %29 = vector.extract_strided_slice %16 {offsets = [0, 256], sizes = [8, 128], strides = [1, 1]} : vector<8x512xf32> to vector<8x128xf32>
    %30 = math.tanh %29 : vector<8x128xf32>
    %31 = vector.extract_strided_slice %16 {offsets = [0, 384], sizes = [8, 128], strides = [1, 1]} : vector<8x512xf32> to vector<8x128xf32>
    %32 = arith.negf %31 : vector<8x128xf32>
    %33 = math.exp %32 : vector<8x128xf32>
    %cst_17 = arith.constant 1.000000e+00 : f32
    %34 = vector.broadcast %cst_17 : f32 to vector<8x128xf32>
    %35 = arith.addf %34, %33 : vector<8x128xf32>
    %36 = arith.divf %34, %35 : vector<8x128xf32>
    %37 = arith.mulf %28, %9 : vector<8x128xf32>
    %38 = arith.mulf %22, %30 : vector<8x128xf32>
    %39 = arith.addf %37, %38 : vector<8x128xf32>
    %40 = math.tanh %39 : vector<8x128xf32>
    %41 = arith.mulf %36, %40 : vector<8x128xf32>
    %c1_i32 = arith.constant 1 : i32
    %c8_i32_18 = arith.constant 8 : i32
    %42 = arith.muli %c1_i32, %c8_i32_18 : i32
    %43 = tpu.assume_multiple %42, 8 : i32
    %44 = arith.index_cast %43 : i32 to index
    %c0_19 = arith.constant 0 : index
    %45 = vector.load %arg11[%44, %c0_19] : memref<64x512xf32, #tpu.memory_space<vmem>>, vector<8x512xf32>
    %46 = arith.truncf %41 : vector<8x128xf32> to vector<8x128xbf16>
    %cst_20 = arith.constant dense<0.000000e+00> : vector<8x512xf32>
    %47 = tpu.matmul %46, %7, %cst_20 {dimension_numbers = #tpu.dot_dimension_numbers<[1], [0], [0], [1], [0, 0, 1, 1], [], []>} : vector<8x128xbf16>, vector<128x512xbf16>, vector<8x512xf32> -> vector<8x512xf32>
    %48 = arith.addf %45, %47 : vector<8x512xf32>
    %49 = vector.extract_strided_slice %48 {offsets = [0, 0], sizes = [8, 128], strides = [1, 1]} : vector<8x512xf32> to vector<8x128xf32>
    %50 = arith.negf %49 : vector<8x128xf32>
    %51 = math.exp %50 : vector<8x128xf32>
    %cst_21 = arith.constant 1.000000e+00 : f32
    %52 = vector.broadcast %cst_21 : f32 to vector<8x128xf32>
    %53 = arith.addf %52, %51 : vector<8x128xf32>
    %54 = arith.divf %52, %53 : vector<8x128xf32>
    %55 = vector.extract_strided_slice %48 {offsets = [0, 128], sizes = [8, 128], strides = [1, 1]} : vector<8x512xf32> to vector<8x128xf32>
    %56 = arith.negf %55 : vector<8x128xf32>
    %57 = math.exp %56 : vector<8x128xf32>
    %cst_22 = arith.constant 1.000000e+00 : f32
    %58 = vector.broadcast %cst_22 : f32 to vector<8x128xf32>
    %59 = arith.addf %58, %57 : vector<8x128xf32>
    %60 = arith.divf %58, %59 : vector<8x128xf32>
    %61 = vector.extract_strided_slice %48 {offsets = [0, 256], sizes = [8, 128], strides = [1, 1]} : vector<8x512xf32> to vector<8x128xf32>
    %62 = math.tanh %61 : vector<8x128xf32>
    %63 = vector.extract_strided_slice %48 {offsets = [0, 384], sizes = [8, 128], strides = [1, 1]} : vector<8x512xf32> to vector<8x128xf32>
    %64 = arith.negf %63 : vector<8x128xf32>
    %65 = math.exp %64 : vector<8x128xf32>
    %cst_23 = arith.constant 1.000000e+00 : f32
    %66 = vector.broadcast %cst_23 : f32 to vector<8x128xf32>
    %67 = arith.addf %66, %65 : vector<8x128xf32>
    %68 = arith.divf %66, %67 : vector<8x128xf32>
    %69 = arith.mulf %60, %39 : vector<8x128xf32>
    %70 = arith.mulf %54, %62 : vector<8x128xf32>
    %71 = arith.addf %69, %70 : vector<8x128xf32>
    %72 = math.tanh %71 : vector<8x128xf32>
    %73 = arith.mulf %68, %72 : vector<8x128xf32>
    %c2_i32 = arith.constant 2 : i32
    %c8_i32_24 = arith.constant 8 : i32
    %74 = arith.muli %c2_i32, %c8_i32_24 : i32
    %75 = tpu.assume_multiple %74, 8 : i32
    %76 = arith.index_cast %75 : i32 to index
    %c0_25 = arith.constant 0 : index
    %77 = vector.load %arg11[%76, %c0_25] : memref<64x512xf32, #tpu.memory_space<vmem>>, vector<8x512xf32>
    %78 = arith.truncf %73 : vector<8x128xf32> to vector<8x128xbf16>
    %cst_26 = arith.constant dense<0.000000e+00> : vector<8x512xf32>
    %79 = tpu.matmul %78, %7, %cst_26 {dimension_numbers = #tpu.dot_dimension_numbers<[1], [0], [0], [1], [0, 0, 1, 1], [], []>} : vector<8x128xbf16>, vector<128x512xbf16>, vector<8x512xf32> -> vector<8x512xf32>
    %80 = arith.addf %77, %79 : vector<8x512xf32>
    %81 = vector.extract_strided_slice %80 {offsets = [0, 0], sizes = [8, 128], strides = [1, 1]} : vector<8x512xf32> to vector<8x128xf32>
    %82 = arith.negf %81 : vector<8x128xf32>
    %83 = math.exp %82 : vector<8x128xf32>
    %cst_27 = arith.constant 1.000000e+00 : f32
    %84 = vector.broadcast %cst_27 : f32 to vector<8x128xf32>
    %85 = arith.addf %84, %83 : vector<8x128xf32>
    %86 = arith.divf %84, %85 : vector<8x128xf32>
    %87 = vector.extract_strided_slice %80 {offsets = [0, 128], sizes = [8, 128], strides = [1, 1]} : vector<8x512xf32> to vector<8x128xf32>
    %88 = arith.negf %87 : vector<8x128xf32>
    %89 = math.exp %88 : vector<8x128xf32>
    %cst_28 = arith.constant 1.000000e+00 : f32
    %90 = vector.broadcast %cst_28 : f32 to vector<8x128xf32>
    %91 = arith.addf %90, %89 : vector<8x128xf32>
    %92 = arith.divf %90, %91 : vector<8x128xf32>
    %93 = vector.extract_strided_slice %80 {offsets = [0, 256], sizes = [8, 128], strides = [1, 1]} : vector<8x512xf32> to vector<8x128xf32>
    %94 = math.tanh %93 : vector<8x128xf32>
    %95 = vector.extract_strided_slice %80 {offsets = [0, 384], sizes = [8, 128], strides = [1, 1]} : vector<8x512xf32> to vector<8x128xf32>
    %96 = arith.negf %95 : vector<8x128xf32>
    %97 = math.exp %96 : vector<8x128xf32>
    %cst_29 = arith.constant 1.000000e+00 : f32
    %98 = vector.broadcast %cst_29 : f32 to vector<8x128xf32>
    %99 = arith.addf %98, %97 : vector<8x128xf32>
    %100 = arith.divf %98, %99 : vector<8x128xf32>
    %101 = arith.mulf %92, %71 : vector<8x128xf32>
    %102 = arith.mulf %86, %94 : vector<8x128xf32>
    %103 = arith.addf %101, %102 : vector<8x128xf32>
    %104 = math.tanh %103 : vector<8x128xf32>
    %105 = arith.mulf %100, %104 : vector<8x128xf32>
    %c3_i32 = arith.constant 3 : i32
    %c8_i32_30 = arith.constant 8 : i32
    %106 = arith.muli %c3_i32, %c8_i32_30 : i32
    %107 = tpu.assume_multiple %106, 8 : i32
    %108 = arith.index_cast %107 : i32 to index
    %c0_31 = arith.constant 0 : index
    %109 = vector.load %arg11[%108, %c0_31] : memref<64x512xf32, #tpu.memory_space<vmem>>, vector<8x512xf32>
    %110 = arith.truncf %105 : vector<8x128xf32> to vector<8x128xbf16>
    %cst_32 = arith.constant dense<0.000000e+00> : vector<8x512xf32>
    %111 = tpu.matmul %110, %7, %cst_32 {dimension_numbers = #tpu.dot_dimension_numbers<[1], [0], [0], [1], [0, 0, 1, 1], [], []>} : vector<8x128xbf16>, vector<128x512xbf16>, vector<8x512xf32> -> vector<8x512xf32>
    %112 = arith.addf %109, %111 : vector<8x512xf32>
    %113 = vector.extract_strided_slice %112 {offsets = [0, 0], sizes = [8, 128], strides = [1, 1]} : vector<8x512xf32> to vector<8x128xf32>
    %114 = arith.negf %113 : vector<8x128xf32>
    %115 = math.exp %114 : vector<8x128xf32>
    %cst_33 = arith.constant 1.000000e+00 : f32
    %116 = vector.broadcast %cst_33 : f32 to vector<8x128xf32>
    %117 = arith.addf %116, %115 : vector<8x128xf32>
    %118 = arith.divf %116, %117 : vector<8x128xf32>
    %119 = vector.extract_strided_slice %112 {offsets = [0, 128], sizes = [8, 128], strides = [1, 1]} : vector<8x512xf32> to vector<8x128xf32>
    %120 = arith.negf %119 : vector<8x128xf32>
    %121 = math.exp %120 : vector<8x128xf32>
    %cst_34 = arith.constant 1.000000e+00 : f32
    %122 = vector.broadcast %cst_34 : f32 to vector<8x128xf32>
    %123 = arith.addf %122, %121 : vector<8x128xf32>
    %124 = arith.divf %122, %123 : vector<8x128xf32>
    %125 = vector.extract_strided_slice %112 {offsets = [0, 256], sizes = [8, 128], strides = [1, 1]} : vector<8x512xf32> to vector<8x128xf32>
    %126 = math.tanh %125 : vector<8x128xf32>
    %127 = vector.extract_strided_slice %112 {offsets = [0, 384], sizes = [8, 128], strides = [1, 1]} : vector<8x512xf32> to vector<8x128xf32>
    %128 = arith.negf %127 : vector<8x128xf32>
    %129 = math.exp %128 : vector<8x128xf32>
    %cst_35 = arith.constant 1.000000e+00 : f32
    %130 = vector.broadcast %cst_35 : f32 to vector<8x128xf32>
    %131 = arith.addf %130, %129 : vector<8x128xf32>
    %132 = arith.divf %130, %131 : vector<8x128xf32>
    %133 = arith.mulf %124, %103 : vector<8x128xf32>
    %134 = arith.mulf %118, %126 : vector<8x128xf32>
    %135 = arith.addf %133, %134 : vector<8x128xf32>
    %136 = math.tanh %135 : vector<8x128xf32>
    %137 = arith.mulf %132, %136 : vector<8x128xf32>
    %c4_i32 = arith.constant 4 : i32
    %c8_i32_36 = arith.constant 8 : i32
    %138 = arith.muli %c4_i32, %c8_i32_36 : i32
    %139 = tpu.assume_multiple %138, 8 : i32
    %140 = arith.index_cast %139 : i32 to index
    %c0_37 = arith.constant 0 : index
    %141 = vector.load %arg11[%140, %c0_37] : memref<64x512xf32, #tpu.memory_space<vmem>>, vector<8x512xf32>
    %142 = arith.truncf %137 : vector<8x128xf32> to vector<8x128xbf16>
    %cst_38 = arith.constant dense<0.000000e+00> : vector<8x512xf32>
    %143 = tpu.matmul %142, %7, %cst_38 {dimension_numbers = #tpu.dot_dimension_numbers<[1], [0], [0], [1], [0, 0, 1, 1], [], []>} : vector<8x128xbf16>, vector<128x512xbf16>, vector<8x512xf32> -> vector<8x512xf32>
    %144 = arith.addf %141, %143 : vector<8x512xf32>
    %145 = vector.extract_strided_slice %144 {offsets = [0, 0], sizes = [8, 128], strides = [1, 1]} : vector<8x512xf32> to vector<8x128xf32>
    %146 = arith.negf %145 : vector<8x128xf32>
    %147 = math.exp %146 : vector<8x128xf32>
    %cst_39 = arith.constant 1.000000e+00 : f32
    %148 = vector.broadcast %cst_39 : f32 to vector<8x128xf32>
    %149 = arith.addf %148, %147 : vector<8x128xf32>
    %150 = arith.divf %148, %149 : vector<8x128xf32>
    %151 = vector.extract_strided_slice %144 {offsets = [0, 128], sizes = [8, 128], strides = [1, 1]} : vector<8x512xf32> to vector<8x128xf32>
    %152 = arith.negf %151 : vector<8x128xf32>
    %153 = math.exp %152 : vector<8x128xf32>
    %cst_40 = arith.constant 1.000000e+00 : f32
    %154 = vector.broadcast %cst_40 : f32 to vector<8x128xf32>
    %155 = arith.addf %154, %153 : vector<8x128xf32>
    %156 = arith.divf %154, %155 : vector<8x128xf32>
    %157 = vector.extract_strided_slice %144 {offsets = [0, 256], sizes = [8, 128], strides = [1, 1]} : vector<8x512xf32> to vector<8x128xf32>
    %158 = math.tanh %157 : vector<8x128xf32>
    %159 = vector.extract_strided_slice %144 {offsets = [0, 384], sizes = [8, 128], strides = [1, 1]} : vector<8x512xf32> to vector<8x128xf32>
    %160 = arith.negf %159 : vector<8x128xf32>
    %161 = math.exp %160 : vector<8x128xf32>
    %cst_41 = arith.constant 1.000000e+00 : f32
    %162 = vector.broadcast %cst_41 : f32 to vector<8x128xf32>
    %163 = arith.addf %162, %161 : vector<8x128xf32>
    %164 = arith.divf %162, %163 : vector<8x128xf32>
    %165 = arith.mulf %156, %135 : vector<8x128xf32>
    %166 = arith.mulf %150, %158 : vector<8x128xf32>
    %167 = arith.addf %165, %166 : vector<8x128xf32>
    %168 = math.tanh %167 : vector<8x128xf32>
    %169 = arith.mulf %164, %168 : vector<8x128xf32>
    %c5_i32 = arith.constant 5 : i32
    %c8_i32_42 = arith.constant 8 : i32
    %170 = arith.muli %c5_i32, %c8_i32_42 : i32
    %171 = tpu.assume_multiple %170, 8 : i32
    %172 = arith.index_cast %171 : i32 to index
    %c0_43 = arith.constant 0 : index
    %173 = vector.load %arg11[%172, %c0_43] : memref<64x512xf32, #tpu.memory_space<vmem>>, vector<8x512xf32>
    %174 = arith.truncf %169 : vector<8x128xf32> to vector<8x128xbf16>
    %cst_44 = arith.constant dense<0.000000e+00> : vector<8x512xf32>
    %175 = tpu.matmul %174, %7, %cst_44 {dimension_numbers = #tpu.dot_dimension_numbers<[1], [0], [0], [1], [0, 0, 1, 1], [], []>} : vector<8x128xbf16>, vector<128x512xbf16>, vector<8x512xf32> -> vector<8x512xf32>
    %176 = arith.addf %173, %175 : vector<8x512xf32>
    %177 = vector.extract_strided_slice %176 {offsets = [0, 0], sizes = [8, 128], strides = [1, 1]} : vector<8x512xf32> to vector<8x128xf32>
    %178 = arith.negf %177 : vector<8x128xf32>
    %179 = math.exp %178 : vector<8x128xf32>
    %cst_45 = arith.constant 1.000000e+00 : f32
    %180 = vector.broadcast %cst_45 : f32 to vector<8x128xf32>
    %181 = arith.addf %180, %179 : vector<8x128xf32>
    %182 = arith.divf %180, %181 : vector<8x128xf32>
    %183 = vector.extract_strided_slice %176 {offsets = [0, 128], sizes = [8, 128], strides = [1, 1]} : vector<8x512xf32> to vector<8x128xf32>
    %184 = arith.negf %183 : vector<8x128xf32>
    %185 = math.exp %184 : vector<8x128xf32>
    %cst_46 = arith.constant 1.000000e+00 : f32
    %186 = vector.broadcast %cst_46 : f32 to vector<8x128xf32>
    %187 = arith.addf %186, %185 : vector<8x128xf32>
    %188 = arith.divf %186, %187 : vector<8x128xf32>
    %189 = vector.extract_strided_slice %176 {offsets = [0, 256], sizes = [8, 128], strides = [1, 1]} : vector<8x512xf32> to vector<8x128xf32>
    %190 = math.tanh %189 : vector<8x128xf32>
    %191 = vector.extract_strided_slice %176 {offsets = [0, 384], sizes = [8, 128], strides = [1, 1]} : vector<8x512xf32> to vector<8x128xf32>
    %192 = arith.negf %191 : vector<8x128xf32>
    %193 = math.exp %192 : vector<8x128xf32>
    %cst_47 = arith.constant 1.000000e+00 : f32
    %194 = vector.broadcast %cst_47 : f32 to vector<8x128xf32>
    %195 = arith.addf %194, %193 : vector<8x128xf32>
    %196 = arith.divf %194, %195 : vector<8x128xf32>
    %197 = arith.mulf %188, %167 : vector<8x128xf32>
    %198 = arith.mulf %182, %190 : vector<8x128xf32>
    %199 = arith.addf %197, %198 : vector<8x128xf32>
    %200 = math.tanh %199 : vector<8x128xf32>
    %201 = arith.mulf %196, %200 : vector<8x128xf32>
    %c6_i32 = arith.constant 6 : i32
    %c8_i32_48 = arith.constant 8 : i32
    %202 = arith.muli %c6_i32, %c8_i32_48 : i32
    %203 = tpu.assume_multiple %202, 8 : i32
    %204 = arith.index_cast %203 : i32 to index
    %c0_49 = arith.constant 0 : index
    %205 = vector.load %arg11[%204, %c0_49] : memref<64x512xf32, #tpu.memory_space<vmem>>, vector<8x512xf32>
    %206 = arith.truncf %201 : vector<8x128xf32> to vector<8x128xbf16>
    %cst_50 = arith.constant dense<0.000000e+00> : vector<8x512xf32>
    %207 = tpu.matmul %206, %7, %cst_50 {dimension_numbers = #tpu.dot_dimension_numbers<[1], [0], [0], [1], [0, 0, 1, 1], [], []>} : vector<8x128xbf16>, vector<128x512xbf16>, vector<8x512xf32> -> vector<8x512xf32>
    %208 = arith.addf %205, %207 : vector<8x512xf32>
    %209 = vector.extract_strided_slice %208 {offsets = [0, 0], sizes = [8, 128], strides = [1, 1]} : vector<8x512xf32> to vector<8x128xf32>
    %210 = arith.negf %209 : vector<8x128xf32>
    %211 = math.exp %210 : vector<8x128xf32>
    %cst_51 = arith.constant 1.000000e+00 : f32
    %212 = vector.broadcast %cst_51 : f32 to vector<8x128xf32>
    %213 = arith.addf %212, %211 : vector<8x128xf32>
    %214 = arith.divf %212, %213 : vector<8x128xf32>
    %215 = vector.extract_strided_slice %208 {offsets = [0, 128], sizes = [8, 128], strides = [1, 1]} : vector<8x512xf32> to vector<8x128xf32>
    %216 = arith.negf %215 : vector<8x128xf32>
    %217 = math.exp %216 : vector<8x128xf32>
    %cst_52 = arith.constant 1.000000e+00 : f32
    %218 = vector.broadcast %cst_52 : f32 to vector<8x128xf32>
    %219 = arith.addf %218, %217 : vector<8x128xf32>
    %220 = arith.divf %218, %219 : vector<8x128xf32>
    %221 = vector.extract_strided_slice %208 {offsets = [0, 256], sizes = [8, 128], strides = [1, 1]} : vector<8x512xf32> to vector<8x128xf32>
    %222 = math.tanh %221 : vector<8x128xf32>
    %223 = vector.extract_strided_slice %208 {offsets = [0, 384], sizes = [8, 128], strides = [1, 1]} : vector<8x512xf32> to vector<8x128xf32>
    %224 = arith.negf %223 : vector<8x128xf32>
    %225 = math.exp %224 : vector<8x128xf32>
    %cst_53 = arith.constant 1.000000e+00 : f32
    %226 = vector.broadcast %cst_53 : f32 to vector<8x128xf32>
    %227 = arith.addf %226, %225 : vector<8x128xf32>
    %228 = arith.divf %226, %227 : vector<8x128xf32>
    %229 = arith.mulf %220, %199 : vector<8x128xf32>
    %230 = arith.mulf %214, %222 : vector<8x128xf32>
    %231 = arith.addf %229, %230 : vector<8x128xf32>
    %232 = math.tanh %231 : vector<8x128xf32>
    %233 = arith.mulf %228, %232 : vector<8x128xf32>
    %c7_i32 = arith.constant 7 : i32
    %c8_i32_54 = arith.constant 8 : i32
    %234 = arith.muli %c7_i32, %c8_i32_54 : i32
    %235 = tpu.assume_multiple %234, 8 : i32
    %236 = arith.index_cast %235 : i32 to index
    %c0_55 = arith.constant 0 : index
    %237 = vector.load %arg11[%236, %c0_55] : memref<64x512xf32, #tpu.memory_space<vmem>>, vector<8x512xf32>
    %238 = arith.truncf %233 : vector<8x128xf32> to vector<8x128xbf16>
    %cst_56 = arith.constant dense<0.000000e+00> : vector<8x512xf32>
    %239 = tpu.matmul %238, %7, %cst_56 {dimension_numbers = #tpu.dot_dimension_numbers<[1], [0], [0], [1], [0, 0, 1, 1], [], []>} : vector<8x128xbf16>, vector<128x512xbf16>, vector<8x512xf32> -> vector<8x512xf32>
    %240 = arith.addf %237, %239 : vector<8x512xf32>
    %241 = vector.extract_strided_slice %240 {offsets = [0, 0], sizes = [8, 128], strides = [1, 1]} : vector<8x512xf32> to vector<8x128xf32>
    %242 = arith.negf %241 : vector<8x128xf32>
    %243 = math.exp %242 : vector<8x128xf32>
    %cst_57 = arith.constant 1.000000e+00 : f32
    %244 = vector.broadcast %cst_57 : f32 to vector<8x128xf32>
    %245 = arith.addf %244, %243 : vector<8x128xf32>
    %246 = arith.divf %244, %245 : vector<8x128xf32>
    %247 = vector.extract_strided_slice %240 {offsets = [0, 128], sizes = [8, 128], strides = [1, 1]} : vector<8x512xf32> to vector<8x128xf32>
    %248 = arith.negf %247 : vector<8x128xf32>
    %249 = math.exp %248 : vector<8x128xf32>
    %cst_58 = arith.constant 1.000000e+00 : f32
    %250 = vector.broadcast %cst_58 : f32 to vector<8x128xf32>
    %251 = arith.addf %250, %249 : vector<8x128xf32>
    %252 = arith.divf %250, %251 : vector<8x128xf32>
    %253 = vector.extract_strided_slice %240 {offsets = [0, 256], sizes = [8, 128], strides = [1, 1]} : vector<8x512xf32> to vector<8x128xf32>
    %254 = math.tanh %253 : vector<8x128xf32>
    %255 = vector.extract_strided_slice %240 {offsets = [0, 384], sizes = [8, 128], strides = [1, 1]} : vector<8x512xf32> to vector<8x128xf32>
    %256 = arith.negf %255 : vector<8x128xf32>
    %257 = math.exp %256 : vector<8x128xf32>
    %cst_59 = arith.constant 1.000000e+00 : f32
    %258 = vector.broadcast %cst_59 : f32 to vector<8x128xf32>
    %259 = arith.addf %258, %257 : vector<8x128xf32>
    %260 = arith.divf %258, %259 : vector<8x128xf32>
    %261 = arith.mulf %252, %231 : vector<8x128xf32>
    %262 = arith.mulf %246, %254 : vector<8x128xf32>
    %263 = arith.addf %261, %262 : vector<8x128xf32>
    %264 = math.tanh %263 : vector<8x128xf32>
    %265 = arith.mulf %260, %264 : vector<8x128xf32>
    %c8_i32_60 = arith.constant 8 : i32
    %c0_61 = arith.constant 0 : index
    %c0_62 = arith.constant 0 : index
    %266 = vector.load %arg9[%c0_61, %c0_62] : memref<8x128xf32, #tpu.memory_space<vmem>>, vector<8x128xf32>
    tpu.vector_store %arg9[%c0_61, %c0_62], %265 {strides = array<i32>} : memref<8x128xf32, #tpu.memory_space<vmem>>, vector<8x128xf32>,
    %c0_63 = arith.constant 0 : index
    %c0_64 = arith.constant 0 : index
    %267 = vector.load %arg10[%c0_63, %c0_64] : memref<8x128xf32, #tpu.memory_space<vmem>>, vector<8x128xf32>
    tpu.vector_store %arg10[%c0_63, %c0_64], %263 {strides = array<i32>} : memref<8x128xf32, #tpu.memory_space<vmem>>, vector<8x128xf32>,
    %268 = arith.truncf %265 : vector<8x128xf32> to vector<8x128xbf16>
    %c0_65 = arith.constant 0 : index
    %c0_66 = arith.constant 0 : index
    %269 = vector.load %arg6[%c0_65, %c0_66] : memref<128x128xbf16, #tpu.memory_space<vmem>>, vector<128x128xbf16>
    %cst_67 = arith.constant dense<0.000000e+00> : vector<8x128xf32>
    %270 = tpu.matmul %268, %269, %cst_67 {dimension_numbers = #tpu.dot_dimension_numbers<[1], [0], [0], [1], [0, 0, 1, 1], [], []>} : vector<8x128xbf16>, vector<128x128xbf16>, vector<8x128xf32> -> vector<8x128xf32>
    %c0_68 = arith.constant 0 : index
    %c0_69 = arith.constant 0 : index
    %271 = vector.load %arg7[%c0_68, %c0_69] : memref<1x128xf32, #tpu.memory_space<vmem>>, vector<1x128xf32>
    %272 = vector.broadcast %271 : vector<1x128xf32> to vector<8x128xf32>
    %273 = arith.addf %270, %272 : vector<8x128xf32>
    %cst_70 = arith.constant dense<0xFF800000> : vector<8xf32>
    %274 = vector.multi_reduction <maximumf>, %273, %cst_70 [1] : vector<8x128xf32> to vector<8xf32>
    %275 = vector.shape_cast %274 : vector<8xf32> to vector<8x1xf32>
    %276 = vector.broadcast %275 : vector<8x1xf32> to vector<8x128xf32>
    %277 = arith.subf %273, %276 : vector<8x128xf32>
    %278 = math.exp %277 : vector<8x128xf32>
    %cst_71 = arith.constant dense<0.000000e+00> : vector<8xf32>
    %279 = vector.multi_reduction <add>, %278, %cst_71 [1] : vector<8x128xf32> to vector<8xf32>
    %280 = vector.shape_cast %279 : vector<8xf32> to vector<8x1xf32>
    %281 = math.log %280 : vector<8x1xf32>
    %282 = vector.broadcast %281 : vector<8x1xf32> to vector<8x128xf32>
    %283 = arith.subf %277, %282 : vector<8x128xf32>
    %c0_72 = arith.constant 0 : index
    %c0_73 = arith.constant 0 : index
    %284 = vector.load %arg8[%c0_72, %c0_73] : memref<8x128xf32, #tpu.memory_space<vmem>>, vector<8x128xf32>
    tpu.vector_store %arg8[%c0_72, %c0_73], %283 {strides = array<i32>} : memref<8x128xf32, #tpu.memory_space<vmem>>, vector<8x128xf32>,
    return
  }
}

</mosaic_0001>

<bundles_post_ra>
// kernel: text_classifier_forward.1
= control target key start
LH: loop header
LB: loop body
LE: loop exit
PB: predicated region body
PF: predicated region fallthrough
CT: control target
= control target key end

     0   :  { %16 = vsyncpa [#allocation4], 0  ;;  %s2085_s16 = smov [#allocation3]   ;;  %s2086_s18 = smov 256   ;;  %s2766_s0 = inlined_call_operand.vmem [shape: bf16[64,32], index: 0, kind: input, shape index: {}]   ;;  %s2767_s1 = inlined_call_operand.vmem [shape: f32[8,128], index: 1, kind: input, shape index: {}]   ;;  %s2768_s2 = inlined_call_operand.vmem [shape: f32[8,128], index: 2, kind: input, shape index: {}]   ;;  %s2769_s3 = inlined_call_operand.vmem [shape: bf16[32,512], index: 3, kind: input, shape index: {}]   ;;  %s2770_s4 = inlined_call_operand.hbm [shape: bf16[128,512], index: 4, kind: input, shape index: {}]   ;;  %s2771_s5 = inlined_call_operand.vmem [shape: f32[1,512], index: 5, kind: input, shape index: {}]   ;;  %s2772_s6 = inlined_call_operand.vmem [shape: bf16[128,128], index: 6, kind: input, shape index: {}]   ;;  %s2773_s7 = inlined_call_operand.vmem [shape: f32[1,128], index: 7, kind: input, shape index: {}]   ;;  %s2774_s8 = inlined_call_operand.vmem [shape: f32[8,128], index: 8, kind: output, shape index: {0}]   ;;  %s2775_s9 = inlined_call_operand.vmem [shape: f32[8,128], index: 9, kind: output, shape index: {1}]   ;;  %s2776_s10 = inlined_call_operand.vmem [shape: f32[8,128], index: 10, kind: output, shape index: {2}]  }
   0x1   :  { %s29_s15 = sshll.u32 %s2770_s4, 4  ;;  %s31_s17 = sshll.u32 %s2085_s16, 4  ;;  %s30_s15 = int_to_ptr.hbm [resolvable:$true] %s29_s15  ;;  %s32_s17 = int_to_ptr.vmem [resolvable:$true] %s31_s17 }
   0x2   :  { %s2087_s19 = smov 16  }
   0x3   :  { %37 = dma.hbm_to_vmem [thread:$0]  %s30_s15, 4096, %s32_s17, [#allocation4], %s2086_s18, %s2086_s18, %s2087_s19  }
   0x4   :  { %2083 = dma.done.wait [#allocation4], 4096  }
   0x5   :  { %2084 = vsyncadd [#allocation4], 4294963200  ;;  %v1655_v0 = vld [vmem:[%s2769_s3 + $0x20] sm:$0xf]  ;;  %v1879_v1 = vld [vmem:[%s2769_s3 + $0x2c] sm:$0xf0] }
   0x6   :  { %v1663_v2 = vld [vmem:[%s2769_s3 + $0x28] sm:$0xf]  ;;  %v1656_v3 = vor.u32 %v1879_v1, %v1655_v0  ;;  %v1880_v4 = vld [vmem:[%s2769_s3 + $0x34] sm:$0xf0]  ;;  %v1878_v5 = vld [vmem:[%s2769_s3 + $0x2c] sm:$0xf] }
   0x7   :  { %v1665_v6 = vld [vmem:[%s2769_s3 + $0x38] sm:$0xf0]  ;;  %v1664_v7 = vor.u32 %v1880_v4, %v1663_v2  ;;  %v1639_v9 = vld [vmem:[%s2769_s3] sm:$0xf]  ;;  %v1875_v10 = vld [vmem:[%s2769_s3 + $0xc] sm:$0xf0] }
   0x8   :  { %v1668_v8 = vor.u32 %v1878_v5, %v1665_v6  ;;  %v1647_v11 = vld [vmem:[%s2769_s3 + $0x8] sm:$0xf]  ;;  %154 = vmatpush.bf16.msra.mxu0 %v1656_v3  ;;  %1921 = vmatpush.bf16.msra.mxu1 %v1656_v3  ;;  %v1640_v12 = vor.u32 %v1875_v10, %v1639_v9  ;;  %v1876_v13 = vld [vmem:[%s2769_s3 + $0x14] sm:$0xf0]  ;;  %v1874_v14 = vld [vmem:[%s2769_s3 + $0xc] sm:$0xf] }
   0x9   :  { %v1649_v15 = vld [vmem:[%s2769_s3 + $0x18] sm:$0xf0]  ;;  %212 = vmatpush.bf16.msra.mxu2 %v1664_v7  ;;  %v1648_v16 = vor.u32 %v1876_v13, %v1647_v11  ;;  %v1877_v18 = vld [vmem:[%s2769_s3 + $0x24] sm:$0xf]  ;;  %vm135_vm0 = vcmask 261120  }
   0xa   :  { %241 = vmatpush.bf16.msra.mxu3 %v1668_v8  ;;  %v1652_v17 = vor.u32 %v1874_v14, %v1649_v15  ;;  %v2188_v19 = vld [vmem:[%s2766_s0] sm:$0xff]  ;;  %v2193_v20 = vld [vmem:[%s2766_s0 + $0x18] sm:$0xff]  ;;  %v1657_v21 = vld [vmem:[%s2769_s3 + $0x30] sm:$0xf0] }
   0xb   :  { %v1660_v22 = vor.u32 %v1877_v18, %v1657_v21  ;;  %v1873_v23 = vld [vmem:[%s2769_s3 + $0x4] sm:$0xf]  ;;  %v1641_v24 = vld [vmem:[%s2769_s3 + $0x10] sm:$0xf0]  ;;  %v1799_v27 = vld [vmem:[#allocation3 + $0xe0] sm:$0xf] }
   0xc   :  { %v1909_v25 = vld [vmem:[#allocation3 + $0xe4] sm:$0xf]  ;;  %155 = vmatpush.bf16.msra.mxu0 %v1640_v12  ;;  %1922 = vmatpush.bf16.msra.mxu1 %v1640_v12  ;;  %v1801_v26 = vld [vmem:[#allocation3 + $0xf0] sm:$0xf0]  ;;  %v1911_v28 = vld [vmem:[#allocation3 + $0xec] sm:$0xf0]  ;;  %v1644_v32 = vor.u32 %v1873_v23, %v1641_v24 }
   0xd   :  { %213 = vmatpush.bf16.msra.mxu2 %v1648_v16  ;;  %v2204_v29 = vor.u32 %v1911_v28, %v1799_v27  ;;  %v1910_v30 = vld [vmem:[#allocation3 + $0xec] sm:$0xf]  ;;  %v1809_v31 = vld [vmem:[#allocation3 + $0xf8] sm:$0xf0]  ;;  %v1783_v33 = vld [vmem:[#allocation3 + $0xc0] sm:$0xf]  ;;  %v2212_v36 = vor.u32 %v1909_v25, %v1801_v26 }
   0xe   :  { %242 = vmatpush.bf16.msra.mxu3 %v1652_v17  ;;  %v1907_v34 = vld [vmem:[#allocation3 + $0xcc] sm:$0xf0]  ;;  %v2206_v35 = vor.u32 %v1910_v30, %v1809_v31  ;;  %v1905_v37 = vld [vmem:[#allocation3 + $0xc4] sm:$0xf]  ;;  %v1785_v38 = vld [vmem:[#allocation3 + $0xd0] sm:$0xf0] }
   0xf   :  { %1669 = vmatmul.msk.bf16.vlgmr.msra.gmra.mxu0 %vm135_vm0, %v2188_v19  ;;  %1672 = vmatmul.msk.bf16.vlgmr.msra.gmra.mxu1 %vm135_vm0, %v2193_v20  ;;  %v1906_v39 = vld [vmem:[#allocation3 + $0xcc] sm:$0xf]  ;;  %v1793_v40 = vld [vmem:[#allocation3 + $0xd8] sm:$0xf0]  ;;  %v1807_v41 = vld [vmem:[#allocation3 + $0xe8] sm:$0xf]  ;;  %v2219_v42 = vor.u32 %v1907_v34, %v1783_v33  ;;  %v2227_v48 = vor.u32 %v1905_v37, %v1785_v38 }
  0x10   :  { %183 = vmatpush.bf16.msrb.mxu1 %v1660_v22  ;;  %1677 = vmatmul.msk.bf16.vlgmr.msra.gmra.mxu2 %vm135_vm0, %v2188_v19  ;;  %v2222_v43 = vor.u32 %v1906_v39, %v1793_v40  ;;  %v1912_v44 = vld [vmem:[#allocation3 + $0xf4] sm:$0xf0]  ;;  %v1767_v45 = vld [vmem:[#allocation3 + $0xa0] sm:$0xf]  ;;  %v1903_v46 = vld [vmem:[#allocation3 + $0xac] sm:$0xf0] }
  0x11   :  { %1681 = vmatmul.msk.bf16.vlgmr.msra.gmra.mxu3 %vm135_vm0, %v2188_v19  ;;  %498 = vmatpush.bf16.msrb.mxu0 %v2204_v29  ;;  %v2224_v47 = vor.u32 %v1912_v44, %v1807_v41  ;;  %v1901_v49 = vld [vmem:[#allocation3 + $0xa4] sm:$0xf]  ;;  %v1769_v50 = vld [vmem:[#allocation3 + $0xb0] sm:$0xf0]  ;;  %v1791_v51 = vld [vmem:[#allocation3 + $0xc8] sm:$0xf]  ;;  %v2231_v55 = vor.u32 %v1903_v46, %v1767_v45 }
  0x12   :  { %537 = vmatpush.bf16.msrb.mxu3 %v2206_v35  ;;  %v1908_v52 = vld [vmem:[#allocation3 + $0xd4] sm:$0xf0]  ;;  %v1902_v53 = vld [vmem:[#allocation3 + $0xac] sm:$0xf]  ;;  %v1777_v54 = vld [vmem:[#allocation3 + $0xb8] sm:$0xf0]  ;;  %v2239_v62 = vor.u32 %v1901_v49, %v1769_v50 }
  0x13   :  { %524 = vmatpush.bf16.msrb.mxu2 %v2224_v47  ;;  %v1751_v56 = vld [vmem:[#allocation3 + $0x80] sm:$0xf]  ;;  %v2234_v57 = vor.u32 %v1908_v52, %v1791_v51  ;;  %v2236_v58 = vor.u32 %v1902_v53, %v1777_v54  ;;  %v1899_v59 = vld [vmem:[#allocation3 + $0x8c] sm:$0xf0]  ;;  %v1775_v60 = vld [vmem:[#allocation3 + $0xa8] sm:$0xf] }
  0x14   :  { %184 = vmatpush.bf16.msrb.mxu1 %v1644_v32  ;;  %v1904_v61 = vld [vmem:[#allocation3 + $0xb4] sm:$0xf0]  ;;  %v1898_v0 = vld [vmem:[#allocation3 + $0x8c] sm:$0xf]  ;;  %v1761_v1 = vld [vmem:[#allocation3 + $0x98] sm:$0xf0]  ;;  %v2245_v2 = vor.u32 %v1899_v59, %v1751_v56 }
  0x15   :  { %499 = vmatpush.bf16.msrb.mxu0 %v2219_v42  ;;  %v2242_v63 = vor.u32 %v1904_v61, %v1775_v60  ;;  %v1735_v3 = vld [vmem:[#allocation3 + $0x60] sm:$0xf]  ;;  %v2248_v4 = vor.u32 %v1898_v0, %v1761_v1  ;;  %v1895_v5 = vld [vmem:[#allocation3 + $0x6c] sm:$0xf0]  ;;  %v1897_v6 = vld [vmem:[#allocation3 + $0x84] sm:$0xf] }
  0x16   :  { %538 = vmatpush.bf16.msrb.mxu3 %v2222_v43  ;;  %v1753_v7 = vld [vmem:[#allocation3 + $0x90] sm:$0xf0]  ;;  %v2253_v8 = vld [vmem:[%s2766_s0 + $0x8] sm:$0xff]  ;;  %v1900_v10 = vld [vmem:[#allocation3 + $0x94] sm:$0xf0]  ;;  %v2258_v11 = vor.u32 %v1895_v5, %v1735_v3 }
  0x17   :  { %525 = vmatpush.bf16.msrb.mxu2 %v2234_v57  ;;  %v1759_v9 = vld [vmem:[#allocation3 + $0x88] sm:$0xf]  ;;  %v2260_v12 = vor.u32 %v1897_v6, %v1753_v7  ;;  %v1719_v13 = vld [vmem:[#allocation3 + $0x40] sm:$0xf]  ;;  %v1891_v14 = vld [vmem:[#allocation3 + $0x4c] sm:$0xf0] }
  0x18   :  { %511 = vmatpush.bf16.msra.mxu1 %v2212_v36  ;;  %v2263_v15 = vor.u32 %v1900_v10, %v1759_v9  ;;  %v1894_v16 = vld [vmem:[#allocation3 + $0x6c] sm:$0xf]  ;;  %v1743_v17 = vld [vmem:[#allocation3 + $0x68] sm:$0xf]  ;;  %v1896_v18 = vld [vmem:[#allocation3 + $0x74] sm:$0xf0]  ;;  %v2276_v26 = vor.u32 %v1891_v14, %v1719_v13 }
  0x19   :  { %500 = vmatpush.bf16.msrb.mxu0 %v2231_v55  ;;  %v1745_v21 = vld [vmem:[#allocation3 + $0x78] sm:$0xf0]  ;;  %v1703_v22 = vld [vmem:[#allocation3 + $0x20] sm:$0xf]  ;;  %v1893_v23 = vld [vmem:[#allocation3 + $0x64] sm:$0xf]  ;;  %v2282_v31 = vor.u32 %v1896_v18, %v1743_v17 }
  0x1a   :  { %539 = vmatpush.bf16.msrb.mxu3 %v2236_v58  ;;  %v1737_v24 = vld [vmem:[#allocation3 + $0x70] sm:$0xf0]  ;;  %v2273_v25 = vor.u32 %v1894_v16, %v1745_v21  ;;  %v1890_v28 = vld [vmem:[#allocation3 + $0x4c] sm:$0xf]  ;;  %v1729_v30 = vld [vmem:[#allocation3 + $0x58] sm:$0xf0] }
  0x1b   :  { %526 = vmatpush.bf16.msrb.mxu2 %v2242_v63  ;;  %v2279_v27 = vor.u32 %v1893_v23, %v1737_v24  ;;  %v1727_v32 = vld [vmem:[#allocation3 + $0x48] sm:$0xf]  ;;  %v2285_v33 = vor.u32 %v1890_v28, %v1729_v30  ;;  %v1889_v34 = vld [vmem:[#allocation3 + $0x44] sm:$0xf]  ;;  %v1721_v37 = vld [vmem:[#allocation3 + $0x50] sm:$0xf0] }
  0x1c   :  { %512 = vmatpush.bf16.msra.mxu1 %v2227_v48  ;;  %v1892_v38 = vld [vmem:[#allocation3 + $0x54] sm:$0xf0]  ;;  %v1886_v39 = vld [vmem:[#allocation3 + $0x2c] sm:$0xf]  ;;  %v1713_v40 = vld [vmem:[#allocation3 + $0x38] sm:$0xf0]  ;;  %v2291_v44 = vor.u32 %v1889_v34, %v1721_v37 }
  0x1d   :  { %501 = vmatpush.bf16.msrb.mxu0 %v2245_v2  ;;  %v1687_v45 = vld [vmem:[#allocation3] sm:$0xf]  ;;  %v1883_v46 = vld [vmem:[#allocation3 + $0xc] sm:$0xf0]  ;;  %v2294_v49 = vor.u32 %v1892_v38, %v1727_v32  ;;  %v1711_v50 = vld [vmem:[#allocation3 + $0x28] sm:$0xf]  ;;  %v2297_v51 = vor.u32 %v1886_v39, %v1713_v40 }
  0x1e   :  { %540 = vmatpush.bf16.msrb.mxu3 %v2248_v4  ;;  %v1888_v52 = vld [vmem:[#allocation3 + $0x34] sm:$0xf0]  ;;  %v1882_v53 = vld [vmem:[#allocation3 + $0xc] sm:$0xf]  ;;  %v1697_v54 = vld [vmem:[#allocation3 + $0x18] sm:$0xf0]  ;;  %v2300_v56 = vor.u32 %v1883_v46, %v1687_v45 }
  0x1f   :  { %1670 = vmatmul.msk.bf16.gmra.mxu0 %vm135_vm0, %v2253_v8  ;;  %1673 = vmatmul.msk.bf16.vlgmr.msrb.gmra.mxu1 %vm135_vm0, %v2188_v19  ;;  %v1887_v19 = vld [vmem:[#allocation3 + $0x2c] sm:$0xf0]  ;;  %v2304_v59 = vor.u32 %v1888_v52, %v1711_v50  ;;  %v2307_v60 = vor.u32 %v1882_v53, %v1697_v54  ;;  %v1695_v0 = vld [vmem:[#allocation3 + $0x8] sm:$0xf]  ;;  %v1884_v1 = vld [vmem:[#allocation3 + $0x14] sm:$0xf0] }
  0x20   :  { %513 = vmatpush.bf16.msra.mxu1 %v2239_v62  ;;  %1678 = vmatmul.msk.bf16.gmra.mxu2 %vm135_vm0, %v2253_v8  ;;  %v2288_v41 = vor.u32 %v1887_v19, %v1703_v22  ;;  %v1871_v61 = vld [vmem:[%s2766_s0 + $0x10] sm:$0xff]  ;;  %v2314_v3 = vor.u32 %v1884_v1, %v1695_v0  ;;  %v1885_v5 = vld [vmem:[#allocation3 + $0x24] sm:$0xf] }
  0x21   :  { %1682 = vmatmul.msk.bf16.gmra.mxu3 %vm135_vm0, %v2253_v8  ;;  %502 = vmatpush.bf16.msrb.mxu0 %v2258_v11  ;;  %v1705_v6 = vld [vmem:[#allocation3 + $0x30] sm:$0xf0]  ;;  %v1881_v9 = vld [vmem:[#allocation3 + $0x4] sm:$0xf] }
  0x22   :  { %527 = vmatpush.bf16.msrb.mxu2 %v2263_v15  ;;  %541 = vmatpush.bf16.msrb.mxu3 %v2273_v25  ;;  %v2322_v7 = vor.u32 %v1885_v5, %v1705_v6  ;;  %v1689_v10 = vld [vmem:[#allocation3 + $0x10] sm:$0xf0] }
  0x23   :  { %v2328_v13 = vor.u32 %v1881_v9, %v1689_v10 }
  0x24   :  { %514 = vmatpush.bf16.msra.mxu1 %v2260_v12 }
  0x25   :  { %503 = vmatpush.bf16.msrb.mxu0 %v2276_v26 }
  0x26   :  { %528 = vmatpush.bf16.msrb.mxu2 %v2282_v31  ;;  %542 = vmatpush.bf16.msrb.mxu3 %v2285_v33 }
  0x28   :  { %515 = vmatpush.bf16.msra.mxu1 %v2279_v27 }
  0x29   :  { %504 = vmatpush.bf16.msrb.mxu0 %v2288_v41 }
  0x2a   :  { %529 = vmatpush.bf16.msrb.mxu2 %v2294_v49  ;;  %543 = vmatpush.bf16.msrb.mxu3 %v2297_v51 }
  0x2c   :  { %516 = vmatpush.bf16.msra.mxu1 %v2291_v44 }
  0x2d   :  { %505 = vmatpush.bf16.msrb.mxu0 %v2300_v56 }
  0x2e   :  { %530 = vmatpush.bf16.msrb.mxu2 %v2304_v59  ;;  %544 = vmatpush.bf16.msrb.mxu3 %v2307_v60 }
  0x2f   :  { %1671 = vmatmul.msk.bf16.gmra.mxu0 %vm135_vm0, %v1871_v61  ;;  %1674 = vmatmul.msk.bf16.gmra.mxu1 %vm135_vm0, %v2253_v8  ;;  %v328_v8 = vld [vmem:[%s2767_s1] sm:$0xff] }
  0x30   :  { %1679 = vmatmul.msk.bf16.gmra.mxu2 %vm135_vm0, %v1871_v61  ;;  %517 = vmatpush.bf16.msra.mxu1 %v2322_v7  ;;  %v337_v14 = vpack.c.bf16 %v328_v8, %v328_v8 }
  0x31   :  { %1683 = vmatmul.msk.bf16.gmra.mxu3 %vm135_vm0, %v1871_v61  ;;  %625 = vmatpush.bf16.msra.mxu0 %v2204_v29 }
  0x32   :  { %664 = vmatpush.bf16.msra.mxu3 %v2206_v35  ;;  %531 = vmatpush.bf16.msrb.mxu2 %v2314_v3 }
  0x34   :  { %518 = vmatpush.bf16.msra.mxu1 %v2328_v13 }
  0x35   :  { %626 = vmatpush.bf16.msra.mxu0 %v2219_v42 }
  0x36   :  { %651 = vmatpush.bf16.msra.mxu2 %v2224_v47  ;;  %665 = vmatpush.bf16.msra.mxu3 %v2222_v43 }
  0x38   :  { %638 = vmatpush.bf16.msrb.mxu1 %v2212_v36 }
  0x39   :  { %627 = vmatpush.bf16.msra.mxu0 %v2231_v55 }
  0x3a   :  { %652 = vmatpush.bf16.msra.mxu2 %v2234_v57  ;;  %666 = vmatpush.bf16.msra.mxu3 %v2236_v58 }
  0x3c   :  { %639 = vmatpush.bf16.msrb.mxu1 %v2227_v48 }
  0x3d   :  { %628 = vmatpush.bf16.msra.mxu0 %v2245_v2 }
  0x3e   :  { %653 = vmatpush.bf16.msra.mxu2 %v2242_v63  ;;  %667 = vmatpush.bf16.msra.mxu3 %v2248_v4 }
  0x3f   :  { %1675 = vmatmul.msk.bf16.gmra.mxu1 %vm135_vm0, %v1871_v61  ;;  %506 = vmatmul.bf16.vlgmr.msrb.gmra.mxu0 %v337_v14 }
  0x40   :  { %1680 = vmatmul.msk.bf16.gmra.mxu2 %vm135_vm0, %v2193_v20  ;;  %640 = vmatpush.bf16.msrb.mxu1 %v2239_v62 }
  0x41   :  { %1684 = vmatmul.msk.bf16.gmra.mxu3 %vm135_vm0, %v2193_v20  ;;  %629 = vmatpush.bf16.msra.mxu0 %v2258_v11 }
  0x42   :  { %654 = vmatpush.bf16.msra.mxu2 %v2263_v15  ;;  %668 = vmatpush.bf16.msra.mxu3 %v2273_v25 }
  0x44   :  { %641 = vmatpush.bf16.msrb.mxu1 %v2260_v12 }
  0x45   :  { %630 = vmatpush.bf16.msra.mxu0 %v2276_v26 }
  0x46   :  { %655 = vmatpush.bf16.msra.mxu2 %v2282_v31  ;;  %669 = vmatpush.bf16.msra.mxu3 %v2285_v33 }
  0x48   :  { %642 = vmatpush.bf16.msrb.mxu1 %v2279_v27 }
  0x49   :  { %631 = vmatpush.bf16.msra.mxu0 %v2288_v41 }
  0x4a   :  { %656 = vmatpush.bf16.msra.mxu2 %v2294_v49  ;;  %670 = vmatpush.bf16.msra.mxu3 %v2297_v51 }
  0x4c   :  { %643 = vmatpush.bf16.msrb.mxu1 %v2291_v44 }
  0x4d   :  { %632 = vmatpush.bf16.msra.mxu0 %v2300_v56 }
  0x4e   :  { %657 = vmatpush.bf16.msra.mxu2 %v2304_v59  ;;  %671 = vmatpush.bf16.msra.mxu3 %v2307_v60 }
  0x4f   :  { %1676 = vmatmul.msk.bf16.gmra.mxu1 %vm135_vm0, %v2193_v20  ;;  %v65_v20 = vld [vmem:[%s2771_s5] sm:$0xf] }
  0x50   :  { %532 = vmatmul.bf16.vlgmr.msrb.gmra.mxu2 %v337_v14  ;;  %644 = vmatpush.bf16.msrb.mxu1 %v2322_v7  ;;  %v2406_v16 = vperm.slane %v65_v20, 0  ;;  %v2420_v30 = vperm.slane %v65_v20, 2  ;;  %v2422_v32 = vperm.slane %v65_v20, 3  ;;  %v2435_v50 = vperm.slane %v65_v20, 1 }
  0x51   :  { %752 = vmatpush.bf16.msrb.mxu0 %v2204_v29  ;;  %545 = vmatmul.bf16.vlgmr.msrb.gmra.mxu3 %v337_v14 }
  0x52   :  { %658 = vmatpush.bf16.msra.mxu2 %v2314_v3  ;;  %791 = vmatpush.bf16.msrb.mxu3 %v2206_v35  ;;  %2778 = vst [vmem:[#allocation6_spill] sm:$0xff] %v2406_v16 }
  0x54   :  { %645 = vmatpush.bf16.msrb.mxu1 %v2328_v13 }
  0x55   :  { %753 = vmatpush.bf16.msrb.mxu0 %v2219_v42 }
  0x56   :  { %778 = vmatpush.bf16.msrb.mxu2 %v2224_v47  ;;  %792 = vmatpush.bf16.msrb.mxu3 %v2222_v43 }
  0x59   :  { %754 = vmatpush.bf16.msrb.mxu0 %v2231_v55 }
  0x5a   :  { %779 = vmatpush.bf16.msrb.mxu2 %v2234_v57  ;;  %793 = vmatpush.bf16.msrb.mxu3 %v2236_v58 }
  0x5d   :  { %755 = vmatpush.bf16.msrb.mxu0 %v2245_v2 }
  0x5e   :  { %780 = vmatpush.bf16.msrb.mxu2 %v2242_v63  ;;  %794 = vmatpush.bf16.msrb.mxu3 %v2248_v4 }
  0x5f   :  { %519 = vmatmul.bf16.vlgmr.msra.gmra.mxu1 %v337_v14 }
  0x60   :  { %765 = vmatpush.bf16.msra.mxu1 %v2212_v36 }
  0x61   :  { %756 = vmatpush.bf16.msrb.mxu0 %v2258_v11 }
  0x62   :  { %781 = vmatpush.bf16.msrb.mxu2 %v2263_v15  ;;  %795 = vmatpush.bf16.msrb.mxu3 %v2273_v25 }
  0x64   :  { %766 = vmatpush.bf16.msra.mxu1 %v2227_v48 }
  0x65   :  { %757 = vmatpush.bf16.msrb.mxu0 %v2276_v26 }
  0x66   :  { %782 = vmatpush.bf16.msrb.mxu2 %v2282_v31  ;;  %796 = vmatpush.bf16.msrb.mxu3 %v2285_v33 }
  0x68   :  { %767 = vmatpush.bf16.msra.mxu1 %v2239_v62 }
  0x69   :  { %758 = vmatpush.bf16.msrb.mxu0 %v2288_v41 }
  0x6a   :  { %783 = vmatpush.bf16.msrb.mxu2 %v2294_v49  ;;  %797 = vmatpush.bf16.msrb.mxu3 %v2297_v51 }
  0x6c   :  { %768 = vmatpush.bf16.msra.mxu1 %v2260_v12 }
  0x6d   :  { %759 = vmatpush.bf16.msrb.mxu0 %v2300_v56 }
  0x6e   :  { %784 = vmatpush.bf16.msrb.mxu2 %v2304_v59  ;;  %798 = vmatpush.bf16.msrb.mxu3 %v2307_v60 }
  0x70   :  { %769 = vmatpush.bf16.msra.mxu1 %v2279_v27 }
  0x72   :  { %785 = vmatpush.bf16.msrb.mxu2 %v2314_v3 }
  0x74   :  { %770 = vmatpush.bf16.msra.mxu1 %v2291_v44 }
  0x78   :  { %771 = vmatpush.bf16.msra.mxu1 %v2322_v7 }
  0x7c   :  { %772 = vmatpush.bf16.msra.mxu1 %v2328_v13 }
  0x8c   :  { %v157_v17 = vpop.f32.mrf.mxu0  ;;  %v172_v18 = vpop.f32.mrf.mxu1 }
  0x8d   :  { %v2409_v21 = vadd.f32 %v172_v18, %v2406_v16 }
  0x8f   :  { %2779 = vst [vmem:[#allocation7_spill] sm:$0xff] %v2409_v21 }
  0x93   :  { %v2411_v22 = vpop.f32.mrf.mxu2 }
  0x94   :  { %v2413_v23 = vpop.f32.mrf.mxu3  ;;  %v159_v24 = vpop.f32.mrf.mxu0 }
  0x95   :  { %v2415_v19 = vpop.f32.mrf.mxu1  ;;  %v2418_v28 = vadd.f32 %v159_v24, %v2406_v16 }
  0x96   :  { %2780 = vst [vmem:[#allocation8_spill] sm:$0xff] %v2415_v19 }
  0x9b   :  { %v217_v34 = vpop.f32.mrf.mxu2 }
  0x9c   :  { %v246_v37 = vpop.f32.mrf.mxu3  ;;  %v2425_v38 = vadd.f32 %v217_v34, %v2420_v30  ;;  %v162_v40 = vpop.f32.mrf.mxu0 }
  0x9d   :  { %v2428_v39 = vadd.f32 %v246_v37, %v2422_v32  ;;  %v2430_v45 = vpop.f32.mrf.mxu1  ;;  %v2433_v46 = vadd.f32 %v162_v40, %v2406_v16 }
  0xa3   :  { %v220_v52 = vpop.f32.mrf.mxu2 }
  0xa4   :  { %v249_v53 = vpop.f32.mrf.mxu3  ;;  %v2438_v54 = vadd.f32 %v220_v52, %v2420_v30  ;;  %v164_v0 = vpop.f32.mrf.mxu0 }
  0xa5   :  { %v2441_v61 = vadd.f32 %v249_v53, %v2422_v32  ;;  %v188_v1 = vpop.f32.mrf.mxu1  ;;  %v2444_v5 = vadd.f32 %v164_v0, %v2406_v16 }
  0xa6   :  { %v2447_v6 = vadd.f32 %v188_v1, %v2435_v50 }
  0xab   :  { %v222_v9 = vpop.f32.mrf.mxu2 }
  0xac   :  { %v251_v10 = vpop.f32.mrf.mxu3  ;;  %v2450_v8 = vadd.f32 %v222_v9, %v2420_v30  ;;  %v167_v20 = vpop.f32.mrf.mxu0 }
  0xad   :  { %v2453_v14 = vadd.f32 %v251_v10, %v2422_v32  ;;  %v191_v18 = vpop.f32.mrf.mxu1  ;;  %v2456_v24 = vadd.f32 %v167_v20, %v2406_v16  ;;  %v158_v20 = vadd.f32 %v157_v17, %v2406_v16 }
  0xae   :  { %2781 = vst [vmem:[#allocation9_spill] sm:$0xff] %v2450_v8  ;;  %v2459_v34 = vadd.f32 %v191_v18, %v2435_v50 }
  0xaf   :  { %2782 = vst [vmem:[#allocation10_spill] sm:$0xff] %v2453_v14 }
  0xb0   :  { %2783 = vst [vmem:[#allocation11_spill] sm:$0xff] %v2456_v24 }
  0xb3   :  { %v225_v37 = vpop.f32.mrf.mxu2 }
  0xb4   :  { %v254_v40 = vpop.f32.mrf.mxu3  ;;  %v2462_v52 = vadd.f32 %v225_v37, %v2420_v30  ;;  %v169_v0 = vpop.f32.mrf.mxu0 }
  0xb5   :  { %v2465_v53 = vadd.f32 %v254_v40, %v2422_v32  ;;  %v193_v1 = vpop.f32.mrf.mxu1  ;;  %v2468_v9 = vadd.f32 %v169_v0, %v2406_v16 }
  0xb6   :  { %2784 = vst [vmem:[#allocation12_spill] sm:$0xff] %v2462_v52  ;;  %v2471_v10 = vadd.f32 %v193_v1, %v2435_v50 }
  0xb7   :  { %2785 = vst [vmem:[#allocation13_spill] sm:$0xff] %v2465_v53 }
  0xb8   :  { %2786 = vst [vmem:[#allocation14_spill] sm:$0xff] %v2468_v9 }
  0xb9   :  { %2787 = vst [vmem:[#allocation15_spill] sm:$0xff] %v2471_v10 }
  0xbb   :  { %v227_v18 = vpop.f32.mrf.mxu2 }
  0xbc   :  { %v256_v19 = vpop.f32.mrf.mxu3  ;;  %v2475_v21 = vadd.f32 %v227_v18, %v2420_v30  ;;  %v507_v52 = vpop.f32.mrf.mxu0 }
  0xbd   :  { %v2478_v37 = vadd.f32 %v256_v19, %v2422_v32  ;;  %v196_v40 = vpop.f32.mrf.mxu1  ;;  %v550_v0 = vadd.f32 %v507_v52, %v158_v20 }
  0xbe   :  { %2788 = vst [vmem:[#allocation16_spill] sm:$0xff] %v2475_v21  ;;  %v2481_v53 = vadd.f32 %v196_v40, %v2435_v50 }
  0xbf   :  { %2789 = vst [vmem:[#allocation17_spill] sm:$0xff] %v2478_v37  ;;  %v1813_v9 = vmul.f32 -1.442695, %v550_v0 }
  0xc0   :  { %2790 = vst [vmem:[#allocation18_spill] sm:$0xff] %v2481_v53 }
  0xc1   :  { %1927 = vpow2.f32 %v1813_v9 }
  0xc3   :  { %v230_v1 = vpop.f32.mrf.mxu2 }
  0xc4   :  { %v259_v24 = vpop.f32.mrf.mxu3  ;;  %v2484_v17 = vadd.f32 %v230_v1, %v2420_v30  ;;  %v509_v21 = vpop.f32.mrf.mxu0 }
  0xc5   :  { %v2487_v16 = vadd.f32 %v259_v24, %v2422_v32  ;;  %v198_v18 = vpop.f32.mrf.mxu1 }
  0xc6   :  { %2791 = vst [vmem:[#allocation19_spill] sm:$0xff] %v2484_v17  ;;  %v2490_v19 = vadd.f32 %v198_v18, %v2435_v50  ;;  %v216_v18 = vadd.f32 %v2411_v22, %v2420_v30 }
  0xc7   :  { %2792 = vst [vmem:[#allocation20_spill] sm:$0xff] %v2487_v16  ;;  %v1928_v37 = vpop.eup %1927 }
  0xc8   :  { %2793 = vst [vmem:[#allocation21_spill] sm:$0xff] %v2490_v19  ;;  %v557_v8 = vadd.f32 1.0, %v1928_v37  ;;  %v245_v37 = vadd.f32 %v2413_v23, %v2422_v32 }
  0xca   :  { %1929 = vrcp.f32 %v557_v8  ;;  %v569_v53 = vand.u32 2147483648, %v557_v8  ;;  %vm563_vm2 = vweird.f32 %v557_v8 }
  0xcb   :  { %v232_v40 = vpop.f32.mrf.mxu2 }
  0xcc   :  { %v261_v52 = vpop.f32.mrf.mxu3  ;;  %v2493_v9 = vadd.f32 %v232_v40, %v2420_v30  ;;  %v570_v22 = vor.u32 1.1754944e-38, %v569_v53 }
  0xcd   :  { %v2496_v20 = vadd.f32 %v261_v52, %v2422_v32  ;;  %v201_v0 = vpop.f32.mrf.mxu1 }
  0xce   :  { %2794 = vst [vmem:[#allocation22_spill] sm:$0xff] %v2493_v9  ;;  %v2499_v24 = vadd.f32 %v201_v0, %v2435_v50  ;;  %v567_v9 = vand.u32 2147483647, %v557_v8 }
  0xcf   :  { %2795 = vst [vmem:[#allocation23_spill] sm:$0xff] %v2496_v20 }
  0xd0   :  { %2796 = vst [vmem:[#allocation24_spill] sm:$0xff] %v2499_v24  ;;  %v1930_v1 = vpop.eup %1929  ;;  %vm568_vm4 = vcmp.eq.f32.partialorder %v567_v9, 8.507059e+37 }
  0xd1   :  { %v559_v21 = vmul.f32 %v1930_v1, %v557_v8  ;;  %vm564_vm1 = vweird.f32 %v1930_v1 }
  0xd2   :  { %vm565_vm3 = vmor %vm563_vm2, %vm564_vm1 }
  0xd3   :  { %v560_v17 = vsub.f32 1.0, %v559_v21  ;;  %v533_v16 = vpop.f32.mrf.mxu2 }
  0xd4   :  { %v546_v19 = vpop.f32.mrf.mxu3  ;;  %v552_v40 = vadd.f32 %v533_v16, %v216_v18  ;;  %v187_v16 = vadd.f32 %v2430_v45, %v2435_v50 }
  0xd5   :  { %v203_v52 = vpop.f32.mrf.mxu1  ;;  %v561_v20 = vmul.f32 %v1930_v1, %v560_v17  ;;  %v553_v14 = vadd.f32 %v546_v19, %v245_v37 }
  0xd6   :  { %v2506_v0 = vadd.f32 %v203_v52, %v2435_v50  ;;  %1931 = vtanh.f32 %v552_v40 }
  0xd7   :  { %v562_v24 = vadd.f32 %v1930_v1, %v561_v20  ;;  %v1815_v23 = vmul.f32 -1.442695, %v553_v14 }
  0xd9   :  { %v566_v30 = vsel %vm565_vm3, %v1930_v1, %v562_v24  ;;  %1933 = vpow2.f32 %v1815_v23 }
  0xda   :  { %v571_v32 = vsel %vm568_vm4, %v570_v22, %v566_v30 }
  0xdb   :  { %v535_v18 = vpop.f32.mrf.mxu2 }
  0xdc   :  { %v548_v21 = vpop.f32.mrf.mxu3  ;;  %v1932_v17 = vpop.eup %1931 }
  0xdd   :  { %v520_v10 = vpop.f32.mrf.mxu1  ;;  %v613_v19 = vmul.f32 %v1932_v17, %v571_v32  ;;  %v329_v21 = vld [vmem:[%s2768_s2] sm:$0xff] }
  0xde   :  { %v551_v37 = vadd.f32 %v520_v10, %v187_v16 }
  0xdf   :  { %v1934_v20 = vpop.eup %1933 }
  0xe0   :  { %v1814_v52 = vmul.f32 -1.442695, %v551_v37  ;;  %v596_v40 = vadd.f32 1.0, %v1934_v20 }
  0xe2   :  { %1935 = vpow2.f32 %v1814_v52  ;;  %vm602_vm10 = vweird.f32 %v596_v40 }
  0xe3   :  { %1937 = vrcp.f32 %v596_v40 }
  0xe5   :  { %v522_v8 = vpop.f32.mrf.mxu1 }
  0xe8   :  { %v1936_v53 = vpop.eup %1935 }
  0xe9   :  { %v576_v24 = vadd.f32 1.0, %v1936_v53  ;;  %v1938_v14 = vpop.eup %1937  ;;  %v608_v53 = vand.u32 2147483648, %v596_v40 }
  0xea   :  { %v598_v45 = vmul.f32 %v1938_v14, %v596_v40  ;;  %vm603_vm9 = vweird.f32 %v1938_v14 }
  0xeb   :  { %1939 = vrcp.f32 %v576_v24  ;;  %v588_v22 = vand.u32 2147483648, %v576_v24  ;;  %v586_v32 = vand.u32 2147483647, %v576_v24  ;;  %vm582_vm6 = vweird.f32 %v576_v24  ;;  %vm604_vm11 = vmor %vm602_vm10, %vm603_vm9 }
  0xec   :  { %v599_v23 = vsub.f32 1.0, %v598_v45  ;;  %v609_v45 = vor.u32 1.1754944e-38, %v608_v53 }
  0xed   :  { %v589_v16 = vor.u32 1.1754944e-38, %v588_v22  ;;  %vm587_vm8 = vcmp.eq.f32.partialorder %v586_v32, 8.507059e+37 }
  0xee   :  { %v600_v37 = vmul.f32 %v1938_v14, %v599_v23 }
  0xf0   :  { %v601_v8 = vadd.f32 %v1938_v14, %v600_v37 }
  0xf1   :  { %v1940_v9 = vpop.eup %1939 }
  0xf2   :  { %v578_v1 = vmul.f32 %v1940_v9, %v576_v24  ;;  %vm583_vm5 = vweird.f32 %v1940_v9  ;;  %v606_v24 = vand.u32 2147483647, %v596_v40 }
  0xf3   :  { %vm584_vm7 = vmor %vm582_vm6, %vm583_vm5 }
  0xf4   :  { %v579_v50 = vsub.f32 1.0, %v578_v1  ;;  %v605_v1 = vsel %vm604_vm11, %v1938_v14, %v601_v8  ;;  %vm607_vm12 = vcmp.eq.f32.partialorder %v606_v24, 8.507059e+37 }
  0xf5   :  { %v610_v22 = vsel %vm607_vm12, %v609_v45, %v605_v1 }
  0xf6   :  { %v580_v30 = vmul.f32 %v1940_v9, %v579_v50 }
  0xf8   :  { %v581_v10 = vadd.f32 %v1940_v9, %v580_v30 }
  0xfa   :  { %v585_v18 = vsel %vm584_vm7, %v1940_v9, %v581_v10 }
  0xfb   :  { %v590_v17 = vsel %vm587_vm8, %v589_v16, %v585_v18 }
  0xfc   :  { %v612_v52 = vmul.f32 %v590_v17, %v329_v21 }
  0xfe   :  { %v2513_v20 = vadd.f32 %v613_v19, %v612_v52 }
 0x100   :  { %1941 = vtanh.f32 %v2513_v20 }
 0x106   :  { %v1942_v50 = vpop.eup %1941 }
 0x107   :  { %v616_v9 = vmul.f32 %v1942_v50, %v610_v22 }
 0x109   :  { %v624_v30 = vpack.c.bf16 %v616_v9, %v616_v9 }
 0x10b   :  { %633 = vmatmul.bf16.vlgmr.msra.gmra.mxu0 %v624_v30  ;;  %646 = vmatmul.bf16.vlgmr.msrb.gmra.mxu1 %v624_v30 }
 0x10c   :  { %659 = vmatmul.bf16.vlgmr.msra.gmra.mxu2 %v624_v30  ;;  %672 = vmatmul.bf16.vlgmr.msra.gmra.mxu3 %v624_v30 }
 0x10d   :  { %879 = vmatpush.bf16.msra.mxu0 %v2204_v29  ;;  %892 = vmatpush.bf16.msrb.mxu1 %v2212_v36 }
 0x10e   :  { %905 = vmatpush.bf16.msra.mxu2 %v2224_v47  ;;  %918 = vmatpush.bf16.msra.mxu3 %v2206_v35 }
 0x111   :  { %880 = vmatpush.bf16.msra.mxu0 %v2219_v42  ;;  %893 = vmatpush.bf16.msrb.mxu1 %v2227_v48 }
 0x112   :  { %906 = vmatpush.bf16.msra.mxu2 %v2234_v57  ;;  %919 = vmatpush.bf16.msra.mxu3 %v2222_v43 }
 0x115   :  { %881 = vmatpush.bf16.msra.mxu0 %v2231_v55  ;;  %894 = vmatpush.bf16.msrb.mxu1 %v2239_v62 }
 0x116   :  { %907 = vmatpush.bf16.msra.mxu2 %v2242_v63  ;;  %920 = vmatpush.bf16.msra.mxu3 %v2236_v58 }
 0x119   :  { %882 = vmatpush.bf16.msra.mxu0 %v2245_v2  ;;  %895 = vmatpush.bf16.msrb.mxu1 %v2260_v12 }
 0x11a   :  { %908 = vmatpush.bf16.msra.mxu2 %v2263_v15  ;;  %921 = vmatpush.bf16.msra.mxu3 %v2248_v4 }
 0x11d   :  { %883 = vmatpush.bf16.msra.mxu0 %v2258_v11  ;;  %896 = vmatpush.bf16.msrb.mxu1 %v2279_v27 }
 0x11e   :  { %909 = vmatpush.bf16.msra.mxu2 %v2282_v31  ;;  %922 = vmatpush.bf16.msra.mxu3 %v2273_v25 }
 0x121   :  { %884 = vmatpush.bf16.msra.mxu0 %v2276_v26  ;;  %897 = vmatpush.bf16.msrb.mxu1 %v2291_v44 }
 0x122   :  { %910 = vmatpush.bf16.msra.mxu2 %v2294_v49  ;;  %923 = vmatpush.bf16.msra.mxu3 %v2285_v33 }
 0x125   :  { %885 = vmatpush.bf16.msra.mxu0 %v2288_v41  ;;  %898 = vmatpush.bf16.msrb.mxu1 %v2322_v7 }
 0x126   :  { %911 = vmatpush.bf16.msra.mxu2 %v2304_v59  ;;  %924 = vmatpush.bf16.msra.mxu3 %v2297_v51 }
 0x129   :  { %886 = vmatpush.bf16.msra.mxu0 %v2300_v56  ;;  %899 = vmatpush.bf16.msrb.mxu1 %v2328_v13 }
 0x12a   :  { %912 = vmatpush.bf16.msra.mxu2 %v2314_v3  ;;  %925 = vmatpush.bf16.msra.mxu3 %v2307_v60 }
 0x188   :  { %v634_v19 = vpop.f32.mrf.mxu0  ;;  %v647_v40 = vpop.f32.mrf.mxu1 }
 0x189   :  { %v677_v14 = vadd.f32 %v634_v19, %v2418_v28  ;;  %v678_v32 = vadd.f32 %v647_v40, %v2447_v6 }
 0x18b   :  { %v1816_v23 = vmul.f32 -1.442695, %v677_v14  ;;  %v1817_v10 = vmul.f32 -1.442695, %v678_v32 }
 0x18d   :  { %1943 = vpow2.f32 %v1816_v23 }
 0x18e   :  { %1945 = vpow2.f32 %v1817_v10 }
 0x18f   :  { %v660_v16 = vpop.f32.mrf.mxu2  ;;  %v673_v21 = vpop.f32.mrf.mxu3 }
 0x190   :  { %v680_v18 = vadd.f32 %v673_v21, %v2428_v39  ;;  %v636_v17 = vpop.f32.mrf.mxu0  ;;  %v649_v37 = vpop.f32.mrf.mxu1  ;;  %v679_v9 = vadd.f32 %v660_v16, %v2425_v38 }
 0x192   :  { %v1818_v52 = vmul.f32 -1.442695, %v680_v18 }
 0x193   :  { %v1944_v8 = vpop.eup %1943 }
 0x194   :  { %v1946_v53 = vpop.eup %1945  ;;  %v684_v24 = vadd.f32 1.0, %v1944_v8  ;;  %1947 = vpow2.f32 %v1818_v52 }
 0x195   :  { %v703_v1 = vadd.f32 1.0, %v1946_v53 }
 0x196   :  { %1949 = vrcp.f32 %v684_v24  ;;  %v696_v32 = vand.u32 2147483648, %v684_v24  ;;  %v694_v21 = vand.u32 2147483647, %v684_v24  ;;  %vm690_vm15 = vweird.f32 %v684_v24 }
 0x197   :  { %1951 = vrcp.f32 %v703_v1  ;;  %v662_v28 = vpop.f32.mrf.mxu2  ;;  %v675_v6 = vpop.f32.mrf.mxu3  ;;  %v715_v23 = vand.u32 2147483648, %v703_v1  ;;  %v713_v17 = vand.u32 2147483647, %v703_v1  ;;  %vm709_vm0 = vweird.f32 %v703_v1 }
 0x198   :  { %v697_v38 = vor.u32 1.1754944e-38, %v696_v32  ;;  %vm695_vm3 = vcmp.eq.f32.partialorder %v694_v21, 8.507059e+37 }
 0x199   :  { %v716_v53 = vor.u32 1.1754944e-38, %v715_v23  ;;  %vm714_vm4 = vcmp.eq.f32.partialorder %v713_v17, 8.507059e+37 }
 0x19a   :  { %v1948_v45 = vpop.eup %1947 }
 0x19b   :  { %v723_v50 = vadd.f32 1.0, %v1948_v45 }
 0x19c   :  { %v1950_v22 = vpop.eup %1949 }
 0x19d   :  { %v1952_v30 = vpop.eup %1951  ;;  %v686_v19 = vmul.f32 %v1950_v22, %v684_v24  ;;  %1953 = vrcp.f32 %v723_v50  ;;  %vm691_vm13 = vweird.f32 %v1950_v22  ;;  %v735_v32 = vand.u32 2147483648, %v723_v50 }
 0x19e   :  { %v705_v39 = vmul.f32 %v1952_v30, %v703_v1  ;;  %1955 = vtanh.f32 %v679_v9  ;;  %vm710_vm14 = vweird.f32 %v1952_v30  ;;  %vm692_vm1 = vmor %vm690_vm15, %vm691_vm13  ;;  %vm729_vm6 = vweird.f32 %v723_v50 }
 0x19f   :  { %v687_v40 = vsub.f32 1.0, %v686_v19  ;;  %vm711_vm2 = vmor %vm709_vm0, %vm710_vm14  ;;  %v736_v21 = vor.u32 1.1754944e-38, %v735_v32 }
 0x1a0   :  { %v706_v14 = vsub.f32 1.0, %v705_v39 }
 0x1a1   :  { %v688_v10 = vmul.f32 %v1950_v22, %v687_v40 }
 0x1a2   :  { %v707_v18 = vmul.f32 %v1952_v30, %v706_v14 }
 0x1a3   :  { %v1954_v37 = vpop.eup %1953  ;;  %v689_v52 = vadd.f32 %v1950_v22, %v688_v10 }
 0x1a4   :  { %v708_v16 = vadd.f32 %v1952_v30, %v707_v18  ;;  %v725_v8 = vmul.f32 %v1954_v37, %v723_v50  ;;  %v1956_v6 = vpop.eup %1955  ;;  %vm730_vm5 = vweird.f32 %v1954_v37 }
 0x1a5   :  { %v693_v28 = vsel %vm692_vm1, %v1950_v22, %v689_v52  ;;  %v733_v22 = vand.u32 2147483647, %v723_v50  ;;  %vm731_vm7 = vmor %vm729_vm6, %vm730_vm5 }
 0x1a6   :  { %v698_v45 = vsel %vm695_vm3, %v697_v38, %v693_v28  ;;  %v712_v9 = vsel %vm711_vm2, %v1952_v30, %v708_v16  ;;  %v726_v19 = vsub.f32 1.0, %v725_v8 }
 0x1a7   :  { %v717_v39 = vsel %vm714_vm4, %v716_v53, %v712_v9  ;;  %v740_v40 = vmul.f32 %v1956_v6, %v698_v45  ;;  %vm734_vm8 = vcmp.eq.f32.partialorder %v733_v22, 8.507059e+37 }
 0x1a8   :  { %v739_v14 = vmul.f32 %v717_v39, %v2513_v20  ;;  %v727_v10 = vmul.f32 %v1954_v37, %v726_v19 }
 0x1aa   :  { %v2553_v24 = vadd.f32 %v740_v40, %v739_v14  ;;  %v728_v1 = vadd.f32 %v1954_v37, %v727_v10 }
 0x1ac   :  { %1957 = vtanh.f32 %v2553_v24  ;;  %v732_v23 = vsel %vm731_vm7, %v1954_v37, %v728_v1 }
 0x1ad   :  { %v737_v18 = vsel %vm734_vm8, %v736_v21, %v732_v23 }
 0x1b2   :  { %v1958_v30 = vpop.eup %1957 }
 0x1b3   :  { %v743_v17 = vmul.f32 %v1958_v30, %v737_v18 }
 0x1b5   :  { %v751_v52 = vpack.c.bf16 %v743_v17, %v743_v17 }
 0x1b7   :  { %760 = vmatmul.bf16.vlgmr.msrb.gmra.mxu0 %v751_v52  ;;  %773 = vmatmul.bf16.vlgmr.msra.gmra.mxu1 %v751_v52 }
 0x1b8   :  { %786 = vmatmul.bf16.vlgmr.msrb.gmra.mxu2 %v751_v52  ;;  %799 = vmatmul.bf16.vlgmr.msrb.gmra.mxu3 %v751_v52 }
 0x1b9   :  { %1006 = vmatpush.bf16.msrb.mxu0 %v2204_v29  ;;  %1019 = vmatpush.bf16.msra.mxu1 %v2212_v36 }
 0x1ba   :  { %1032 = vmatpush.bf16.msrb.mxu2 %v2224_v47  ;;  %1045 = vmatpush.bf16.msrb.mxu3 %v2206_v35 }
 0x1bd   :  { %1007 = vmatpush.bf16.msrb.mxu0 %v2219_v42  ;;  %1020 = vmatpush.bf16.msra.mxu1 %v2227_v48 }
 0x1be   :  { %1033 = vmatpush.bf16.msrb.mxu2 %v2234_v57  ;;  %1046 = vmatpush.bf16.msrb.mxu3 %v2222_v43 }
 0x1c1   :  { %1008 = vmatpush.bf16.msrb.mxu0 %v2231_v55  ;;  %1021 = vmatpush.bf16.msra.mxu1 %v2239_v62 }
 0x1c2   :  { %1034 = vmatpush.bf16.msrb.mxu2 %v2242_v63  ;;  %1047 = vmatpush.bf16.msrb.mxu3 %v2236_v58 }
 0x1c5   :  { %1009 = vmatpush.bf16.msrb.mxu0 %v2245_v2  ;;  %1022 = vmatpush.bf16.msra.mxu1 %v2260_v12 }
 0x1c6   :  { %1035 = vmatpush.bf16.msrb.mxu2 %v2263_v15  ;;  %1048 = vmatpush.bf16.msrb.mxu3 %v2248_v4 }
 0x1c9   :  { %1010 = vmatpush.bf16.msrb.mxu0 %v2258_v11  ;;  %1023 = vmatpush.bf16.msra.mxu1 %v2279_v27 }
 0x1ca   :  { %1036 = vmatpush.bf16.msrb.mxu2 %v2282_v31  ;;  %1049 = vmatpush.bf16.msrb.mxu3 %v2273_v25 }
 0x1cd   :  { %1011 = vmatpush.bf16.msrb.mxu0 %v2276_v26  ;;  %1024 = vmatpush.bf16.msra.mxu1 %v2291_v44 }
 0x1ce   :  { %1037 = vmatpush.bf16.msrb.mxu2 %v2294_v49  ;;  %1050 = vmatpush.bf16.msrb.mxu3 %v2285_v33 }
 0x1d1   :  { %1012 = vmatpush.bf16.msrb.mxu0 %v2288_v41  ;;  %1025 = vmatpush.bf16.msra.mxu1 %v2322_v7 }
 0x1d2   :  { %1038 = vmatpush.bf16.msrb.mxu2 %v2304_v59  ;;  %1051 = vmatpush.bf16.msrb.mxu3 %v2297_v51 }
 0x1d5   :  { %1013 = vmatpush.bf16.msrb.mxu0 %v2300_v56  ;;  %1026 = vmatpush.bf16.msra.mxu1 %v2328_v13 }
 0x1d6   :  { %1039 = vmatpush.bf16.msrb.mxu2 %v2314_v3  ;;  %1052 = vmatpush.bf16.msrb.mxu3 %v2307_v60 }
 0x234   :  { %v761_v20 = vpop.f32.mrf.mxu0  ;;  %v774_v50 = vpop.f32.mrf.mxu1 }
 0x235   :  { %v804_v37 = vadd.f32 %v761_v20, %v2433_v46  ;;  %v805_v38 = vadd.f32 %v774_v50, %v2459_v34 }
 0x237   :  { %v1819_v16 = vmul.f32 -1.442695, %v804_v37  ;;  %v1820_v8 = vmul.f32 -1.442695, %v805_v38 }
 0x239   :  { %1959 = vpow2.f32 %v1819_v16 }
 0x23a   :  { %1961 = vpow2.f32 %v1820_v8 }
 0x23b   :  { %v787_v53 = vpop.f32.mrf.mxu2  ;;  %v800_v28 = vpop.f32.mrf.mxu3 }
 0x23c   :  { %v807_v6 = vadd.f32 %v800_v28, %v2441_v61  ;;  %v763_v45 = vpop.f32.mrf.mxu0  ;;  %v776_v9 = vpop.f32.mrf.mxu1  ;;  %v806_v23 = vadd.f32 %v787_v53, %v2438_v54 }
 0x23e   :  { %v1821_v19 = vmul.f32 -1.442695, %v807_v6 }
 0x23f   :  { %v1960_v39 = vpop.eup %1959 }
 0x240   :  { %v1962_v40 = vpop.eup %1961  ;;  %v811_v14 = vadd.f32 1.0, %v1960_v39  ;;  %1963 = vpow2.f32 %v1821_v19 }
 0x241   :  { %v830_v10 = vadd.f32 1.0, %v1962_v40 }
 0x242   :  { %1965 = vrcp.f32 %v811_v14  ;;  %v823_v52 = vand.u32 2147483648, %v811_v14  ;;  %v821_v37 = vand.u32 2147483647, %v811_v14  ;;  %vm817_vm11 = vweird.f32 %v811_v14 }
 0x243   :  { %1967 = vrcp.f32 %v830_v10  ;;  %v789_v46 = vpop.f32.mrf.mxu2  ;;  %v802_v34 = vpop.f32.mrf.mxu3  ;;  %v842_v20 = vand.u32 2147483648, %v830_v10  ;;  %v840_v16 = vand.u32 2147483647, %v830_v10  ;;  %vm836_vm12 = vweird.f32 %v830_v10 }
 0x244   :  { %v824_v54 = vor.u32 1.1754944e-38, %v823_v52  ;;  %vm822_vm15 = vcmp.eq.f32.partialorder %v821_v37, 8.507059e+37 }
 0x245   :  { %v843_v45 = vor.u32 1.1754944e-38, %v842_v20  ;;  %vm841_vm0 = vcmp.eq.f32.partialorder %v840_v16, 8.507059e+37 }
 0x246   :  { %v1964_v1 = vpop.eup %1963 }
 0x247   :  { %v850_v32 = vadd.f32 1.0, %v1964_v1 }
 0x248   :  { %v1966_v22 = vpop.eup %1965 }
 0x249   :  { %v1968_v21 = vpop.eup %1967  ;;  %v813_v30 = vmul.f32 %v1966_v22, %v811_v14  ;;  %1969 = vrcp.f32 %v850_v32  ;;  %vm818_vm9 = vweird.f32 %v1966_v22  ;;  %vm856_vm2 = vweird.f32 %v850_v32 }
 0x24a   :  { %v832_v61 = vmul.f32 %v1968_v21, %v830_v10  ;;  %1971 = vtanh.f32 %v806_v23  ;;  %vm837_vm10 = vweird.f32 %v1968_v21  ;;  %vm819_vm13 = vmor %vm817_vm11, %vm818_vm9 }
 0x24b   :  { %v814_v18 = vsub.f32 1.0, %v813_v30  ;;  %vm838_vm14 = vmor %vm836_vm12, %vm837_vm10 }
 0x24c   :  { %v833_v17 = vsub.f32 1.0, %v832_v61  ;;  %v862_v61 = vand.u32 2147483648, %v850_v32 }
 0x24d   :  { %v815_v50 = vmul.f32 %v1966_v22, %v814_v18 }
 0x24e   :  { %v834_v38 = vmul.f32 %v1968_v21, %v833_v17  ;;  %v863_v17 = vor.u32 1.1754944e-38, %v862_v61 }
 0x24f   :  { %v1970_v8 = vpop.eup %1969  ;;  %v816_v28 = vadd.f32 %v1966_v22, %v815_v50 }
 0x250   :  { %v835_v53 = vadd.f32 %v1968_v21, %v834_v38  ;;  %v852_v6 = vmul.f32 %v1970_v8, %v850_v32  ;;  %v1972_v19 = vpop.eup %1971  ;;  %vm857_vm1 = vweird.f32 %v1970_v8  ;;  %v2797_v38 = vld [vmem:[#allocation15_spill] sm:$0xff] }
 0x251   :  { %v820_v9 = vsel %vm819_vm13, %v1966_v22, %v816_v28  ;;  %v860_v22 = vand.u32 2147483647, %v850_v32  ;;  %vm858_vm3 = vmor %vm856_vm2, %vm857_vm1 }
 0x252   :  { %v825_v39 = vsel %vm822_vm15, %v824_v54, %v820_v9  ;;  %v839_v40 = vsel %vm838_vm14, %v1968_v21, %v835_v53  ;;  %v853_v46 = vsub.f32 1.0, %v852_v6  ;;  %v2798_v6 = vld [vmem:[#allocation10_spill] sm:$0xff] }
 0x253   :  { %v844_v34 = vsel %vm841_vm0, %v843_v45, %v839_v40  ;;  %v867_v1 = vmul.f32 %v1972_v19, %v825_v39  ;;  %vm861_vm4 = vcmp.eq.f32.partialorder %v860_v22, 8.507059e+37  ;;  %v2799_v22 = vld [vmem:[#allocation9_spill] sm:$0xff] }
 0x254   :  { %v866_v23 = vmul.f32 %v844_v34, %v2553_v24  ;;  %v854_v30 = vmul.f32 %v1970_v8, %v853_v46 }
 0x256   :  { %v2593_v14 = vadd.f32 %v867_v1, %v866_v23  ;;  %v855_v10 = vadd.f32 %v1970_v8, %v854_v30 }
 0x258   :  { %1973 = vtanh.f32 %v2593_v14  ;;  %v859_v18 = vsel %vm858_vm3, %v1970_v8, %v855_v10 }
 0x259   :  { %v864_v52 = vsel %vm861_vm4, %v863_v17, %v859_v18 }
 0x25e   :  { %v1974_v21 = vpop.eup %1973 }
 0x25f   :  { %v870_v20 = vmul.f32 %v1974_v21, %v864_v52 }
 0x261   :  { %v878_v50 = vpack.c.bf16 %v870_v20, %v870_v20 }
 0x263   :  { %887 = vmatmul.bf16.vlgmr.msra.gmra.mxu0 %v878_v50  ;;  %900 = vmatmul.bf16.vlgmr.msrb.gmra.mxu1 %v878_v50 }
 0x264   :  { %913 = vmatmul.bf16.vlgmr.msra.gmra.mxu2 %v878_v50  ;;  %926 = vmatmul.bf16.vlgmr.msra.gmra.mxu3 %v878_v50 }
 0x265   :  { %1133 = vmatpush.bf16.msra.mxu0 %v2204_v29  ;;  %1146 = vmatpush.bf16.msrb.mxu1 %v2212_v36 }
 0x266   :  { %1159 = vmatpush.bf16.msra.mxu2 %v2224_v47  ;;  %1172 = vmatpush.bf16.msra.mxu3 %v2206_v35 }
 0x269   :  { %1134 = vmatpush.bf16.msra.mxu0 %v2219_v42  ;;  %1147 = vmatpush.bf16.msrb.mxu1 %v2227_v48 }
 0x26a   :  { %1160 = vmatpush.bf16.msra.mxu2 %v2234_v57  ;;  %1173 = vmatpush.bf16.msra.mxu3 %v2222_v43 }
 0x26d   :  { %1135 = vmatpush.bf16.msra.mxu0 %v2231_v55  ;;  %1148 = vmatpush.bf16.msrb.mxu1 %v2239_v62 }
 0x26e   :  { %1161 = vmatpush.bf16.msra.mxu2 %v2242_v63  ;;  %1174 = vmatpush.bf16.msra.mxu3 %v2236_v58 }
 0x271   :  { %1136 = vmatpush.bf16.msra.mxu0 %v2245_v2  ;;  %1149 = vmatpush.bf16.msrb.mxu1 %v2260_v12 }
 0x272   :  { %1162 = vmatpush.bf16.msra.mxu2 %v2263_v15  ;;  %1175 = vmatpush.bf16.msra.mxu3 %v2248_v4 }
 0x275   :  { %1137 = vmatpush.bf16.msra.mxu0 %v2258_v11  ;;  %1150 = vmatpush.bf16.msrb.mxu1 %v2279_v27 }
 0x276   :  { %1163 = vmatpush.bf16.msra.mxu2 %v2282_v31  ;;  %1176 = vmatpush.bf16.msra.mxu3 %v2273_v25 }
 0x279   :  { %1138 = vmatpush.bf16.msra.mxu0 %v2276_v26  ;;  %1151 = vmatpush.bf16.msrb.mxu1 %v2291_v44 }
 0x27a   :  { %1164 = vmatpush.bf16.msra.mxu2 %v2294_v49  ;;  %1177 = vmatpush.bf16.msra.mxu3 %v2285_v33 }
 0x27d   :  { %1139 = vmatpush.bf16.msra.mxu0 %v2288_v41  ;;  %1152 = vmatpush.bf16.msrb.mxu1 %v2322_v7 }
 0x27e   :  { %1165 = vmatpush.bf16.msra.mxu2 %v2304_v59  ;;  %1178 = vmatpush.bf16.msra.mxu3 %v2297_v51 }
 0x281   :  { %1140 = vmatpush.bf16.msra.mxu0 %v2300_v56  ;;  %1153 = vmatpush.bf16.msrb.mxu1 %v2328_v13 }
 0x282   :  { %1166 = vmatpush.bf16.msra.mxu2 %v2314_v3  ;;  %1179 = vmatpush.bf16.msra.mxu3 %v2307_v60 }
 0x2e0   :  { %v888_v24 = vpop.f32.mrf.mxu0  ;;  %v901_v32 = vpop.f32.mrf.mxu1 }
 0x2e1   :  { %v931_v37 = vadd.f32 %v888_v24, %v2444_v5  ;;  %v932_v16 = vadd.f32 %v901_v32, %v2797_v38 }
 0x2e3   :  { %v1822_v8 = vmul.f32 -1.442695, %v931_v37  ;;  %v1823_v28 = vmul.f32 -1.442695, %v932_v16 }
 0x2e5   :  { %1975 = vpow2.f32 %v1822_v8 }
 0x2e6   :  { %1977 = vpow2.f32 %v1823_v28 }
 0x2e7   :  { %v914_v54 = vpop.f32.mrf.mxu2  ;;  %v927_v53 = vpop.f32.mrf.mxu3 }
 0x2e8   :  { %v934_v45 = vadd.f32 %v927_v53, %v2798_v6  ;;  %v890_v9 = vpop.f32.mrf.mxu0  ;;  %v903_v19 = vpop.f32.mrf.mxu1  ;;  %v933_v18 = vadd.f32 %v914_v54, %v2799_v22 }
 0x2ea   :  { %v1824_v39 = vmul.f32 -1.442695, %v934_v45 }
 0x2eb   :  { %v1976_v40 = vpop.eup %1975 }
 0x2ec   :  { %v1978_v46 = vpop.eup %1977  ;;  %v938_v34 = vadd.f32 1.0, %v1976_v40  ;;  %1979 = vpow2.f32 %v1824_v39 }
 0x2ed   :  { %v957_v1 = vadd.f32 1.0, %v1978_v46 }
 0x2ee   :  { %1981 = vrcp.f32 %v938_v34  ;;  %v950_v24 = vand.u32 2147483648, %v938_v34  ;;  %v948_v38 = vand.u32 2147483647, %v938_v34  ;;  %vm944_vm7 = vweird.f32 %v938_v34 }
 0x2ef   :  { %1983 = vrcp.f32 %v957_v1  ;;  %v916_v5 = vpop.f32.mrf.mxu2  ;;  %v929_v23 = vpop.f32.mrf.mxu3  ;;  %v969_v32 = vand.u32 2147483648, %v957_v1  ;;  %v967_v8 = vand.u32 2147483647, %v957_v1  ;;  %vm963_vm8 = vweird.f32 %v957_v1 }
 0x2f0   :  { %v951_v54 = vor.u32 1.1754944e-38, %v950_v24  ;;  %vm949_vm11 = vcmp.eq.f32.partialorder %v948_v38, 8.507059e+37 }
 0x2f1   :  { %v970_v9 = vor.u32 1.1754944e-38, %v969_v32  ;;  %vm968_vm12 = vcmp.eq.f32.partialorder %v967_v8, 8.507059e+37 }
 0x2f2   :  { %v1980_v30 = vpop.eup %1979 }
 0x2f3   :  { %v977_v10 = vadd.f32 1.0, %v1980_v30 }
 0x2f4   :  { %v1982_v61 = vpop.eup %1981 }
 0x2f5   :  { %v1984_v17 = vpop.eup %1983  ;;  %v940_v21 = vmul.f32 %v1982_v61, %v938_v34  ;;  %1985 = vrcp.f32 %v977_v10  ;;  %vm945_vm5 = vweird.f32 %v1982_v61  ;;  %vm983_vm14 = vweird.f32 %v977_v10 }
 0x2f6   :  { %v959_v52 = vmul.f32 %v1984_v17, %v957_v1  ;;  %1987 = vtanh.f32 %v933_v18  ;;  %vm964_vm6 = vweird.f32 %v1984_v17  ;;  %vm946_vm9 = vmor %vm944_vm7, %vm945_vm5 }
 0x2f7   :  { %v941_v20 = vsub.f32 1.0, %v940_v21  ;;  %vm965_vm10 = vmor %vm963_vm8, %vm964_vm6  ;;  %v989_v21 = vand.u32 2147483648, %v977_v10 }
 0x2f8   :  { %v960_v50 = vsub.f32 1.0, %v959_v52 }
 0x2f9   :  { %v942_v37 = vmul.f32 %v1982_v61, %v941_v20  ;;  %v990_v20 = vor.u32 1.1754944e-38, %v989_v21 }
 0x2fa   :  { %v961_v16 = vmul.f32 %v1984_v17, %v960_v50 }
 0x2fb   :  { %v1986_v28 = vpop.eup %1985  ;;  %v943_v53 = vadd.f32 %v1982_v61, %v942_v37  ;;  %v2800_v37 = vld [vmem:[#allocation11_spill] sm:$0xff] }
 0x2fc   :  { %v962_v6 = vadd.f32 %v1984_v17, %v961_v16  ;;  %v979_v45 = vmul.f32 %v1986_v28, %v977_v10  ;;  %v1988_v39 = vpop.eup %1987  ;;  %vm984_vm13 = vweird.f32 %v1986_v28  ;;  %v2801_v16 = vld [vmem:[#allocation18_spill] sm:$0xff] }
 0x2fd   :  { %v947_v19 = vsel %vm946_vm9, %v1982_v61, %v943_v53  ;;  %v987_v61 = vand.u32 2147483647, %v977_v10  ;;  %vm985_vm15 = vmor %vm983_vm14, %vm984_vm13 }
 0x2fe   :  { %v952_v40 = vsel %vm949_vm11, %v951_v54, %v947_v19  ;;  %v966_v46 = vsel %vm965_vm10, %v1984_v17, %v962_v6  ;;  %v980_v5 = vsub.f32 1.0, %v979_v45  ;;  %v2802_v45 = vld [vmem:[#allocation13_spill] sm:$0xff] }
 0x2ff   :  { %v971_v23 = vsel %vm968_vm12, %v970_v9, %v966_v46  ;;  %v994_v30 = vmul.f32 %v1988_v39, %v952_v40  ;;  %vm988_vm0 = vcmp.eq.f32.partialorder %v987_v61, 8.507059e+37 }
 0x300   :  { %v993_v22 = vmul.f32 %v971_v23, %v2593_v14  ;;  %v981_v18 = vmul.f32 %v1986_v28, %v980_v5 }
 0x302   :  { %v2633_v34 = vadd.f32 %v994_v30, %v993_v22  ;;  %v982_v1 = vadd.f32 %v1986_v28, %v981_v18 }
 0x304   :  { %1989 = vtanh.f32 %v2633_v34  ;;  %v986_v52 = vsel %vm985_vm15, %v1986_v28, %v982_v1 }
 0x305   :  { %v991_v50 = vsel %vm988_vm0, %v990_v20, %v986_v52  ;;  %v2803_v52 = vld [vmem:[#allocation12_spill] sm:$0xff] }
 0x30a   :  { %v1990_v17 = vpop.eup %1989 }
 0x30b   :  { %v997_v24 = vmul.f32 %v1990_v17, %v991_v50 }
 0x30d   :  { %v1005_v32 = vpack.c.bf16 %v997_v24, %v997_v24 }
 0x30f   :  { %1014 = vmatmul.bf16.vlgmr.msrb.gmra.mxu0 %v1005_v32  ;;  %1027 = vmatmul.bf16.vlgmr.msra.gmra.mxu1 %v1005_v32 }
 0x310   :  { %1040 = vmatmul.bf16.vlgmr.msrb.gmra.mxu2 %v1005_v32  ;;  %1053 = vmatmul.bf16.vlgmr.msrb.gmra.mxu3 %v1005_v32 }
 0x311   :  { %1260 = vmatpush.bf16.msrb.mxu0 %v2204_v29  ;;  %1273 = vmatpush.bf16.msra.mxu1 %v2212_v36 }
 0x312   :  { %1286 = vmatpush.bf16.msrb.mxu2 %v2224_v47  ;;  %1299 = vmatpush.bf16.msrb.mxu3 %v2206_v35 }
 0x315   :  { %1261 = vmatpush.bf16.msrb.mxu0 %v2219_v42  ;;  %1274 = vmatpush.bf16.msra.mxu1 %v2227_v48 }
 0x316   :  { %1287 = vmatpush.bf16.msrb.mxu2 %v2234_v57  ;;  %1300 = vmatpush.bf16.msrb.mxu3 %v2222_v43 }
 0x319   :  { %1262 = vmatpush.bf16.msrb.mxu0 %v2231_v55  ;;  %1275 = vmatpush.bf16.msra.mxu1 %v2239_v62 }
 0x31a   :  { %1288 = vmatpush.bf16.msrb.mxu2 %v2242_v63  ;;  %1301 = vmatpush.bf16.msrb.mxu3 %v2236_v58 }
 0x31d   :  { %1263 = vmatpush.bf16.msrb.mxu0 %v2245_v2  ;;  %1276 = vmatpush.bf16.msra.mxu1 %v2260_v12 }
 0x31e   :  { %1289 = vmatpush.bf16.msrb.mxu2 %v2263_v15  ;;  %1302 = vmatpush.bf16.msrb.mxu3 %v2248_v4 }
 0x321   :  { %1264 = vmatpush.bf16.msrb.mxu0 %v2258_v11  ;;  %1277 = vmatpush.bf16.msra.mxu1 %v2279_v27 }
 0x322   :  { %1290 = vmatpush.bf16.msrb.mxu2 %v2282_v31  ;;  %1303 = vmatpush.bf16.msrb.mxu3 %v2273_v25 }
 0x325   :  { %1265 = vmatpush.bf16.msrb.mxu0 %v2276_v26  ;;  %1278 = vmatpush.bf16.msra.mxu1 %v2291_v44 }
 0x326   :  { %1291 = vmatpush.bf16.msrb.mxu2 %v2294_v49  ;;  %1304 = vmatpush.bf16.msrb.mxu3 %v2285_v33 }
 0x329   :  { %1266 = vmatpush.bf16.msrb.mxu0 %v2288_v41  ;;  %1279 = vmatpush.bf16.msra.mxu1 %v2322_v7 }
 0x32a   :  { %1292 = vmatpush.bf16.msrb.mxu2 %v2304_v59  ;;  %1305 = vmatpush.bf16.msrb.mxu3 %v2297_v51 }
 0x32d   :  { %1267 = vmatpush.bf16.msrb.mxu0 %v2300_v56  ;;  %1280 = vmatpush.bf16.msra.mxu1 %v2328_v13 }
 0x32e   :  { %1293 = vmatpush.bf16.msrb.mxu2 %v2314_v3  ;;  %1306 = vmatpush.bf16.msrb.mxu3 %v2307_v60 }
 0x38c   :  { %v1015_v14 = vpop.f32.mrf.mxu0  ;;  %v1028_v10 = vpop.f32.mrf.mxu1 }
 0x38d   :  { %v1058_v38 = vadd.f32 %v1015_v14, %v2800_v37  ;;  %v1059_v8 = vadd.f32 %v1028_v10, %v2801_v16 }
 0x38f   :  { %v1825_v28 = vmul.f32 -1.442695, %v1058_v38  ;;  %v1826_v53 = vmul.f32 -1.442695, %v1059_v8 }
 0x391   :  { %1991 = vpow2.f32 %v1825_v28 }
 0x392   :  { %1993 = vpow2.f32 %v1826_v53 }
 0x393   :  { %v1041_v54 = vpop.f32.mrf.mxu2  ;;  %v1054_v6 = vpop.f32.mrf.mxu3 }
 0x394   :  { %v1061_v9 = vadd.f32 %v1054_v6, %v2802_v45  ;;  %v1017_v19 = vpop.f32.mrf.mxu0  ;;  %v1030_v39 = vpop.f32.mrf.mxu1  ;;  %v1060_v20 = vadd.f32 %v1041_v54, %v2803_v52 }
 0x396   :  { %v1827_v40 = vmul.f32 -1.442695, %v1061_v9 }
 0x397   :  { %v1992_v46 = vpop.eup %1991 }
 0x398   :  { %v1994_v5 = vpop.eup %1993  ;;  %v1065_v23 = vadd.f32 1.0, %v1992_v46  ;;  %1995 = vpow2.f32 %v1827_v40 }
 0x399   :  { %v1084_v30 = vadd.f32 1.0, %v1994_v5 }
 0x39a   :  { %1997 = vrcp.f32 %v1065_v23  ;;  %v1077_v10 = vand.u32 2147483648, %v1065_v23  ;;  %v1075_v16 = vand.u32 2147483647, %v1065_v23  ;;  %vm1071_vm3 = vweird.f32 %v1065_v23 }
 0x39b   :  { %1999 = vrcp.f32 %v1084_v30  ;;  %v1043_v22 = vpop.f32.mrf.mxu2  ;;  %v1056_v18 = vpop.f32.mrf.mxu3  ;;  %v1096_v37 = vand.u32 2147483648, %v1084_v30  ;;  %v1094_v28 = vand.u32 2147483647, %v1084_v30  ;;  %vm1090_vm4 = vweird.f32 %v1084_v30 }
 0x39c   :  { %v1078_v54 = vor.u32 1.1754944e-38, %v1077_v10  ;;  %vm1076_vm7 = vcmp.eq.f32.partialorder %v1075_v16, 8.507059e+37 }
 0x39d   :  { %v1097_v19 = vor.u32 1.1754944e-38, %v1096_v37  ;;  %vm1095_vm8 = vcmp.eq.f32.partialorder %v1094_v28, 8.507059e+37 }
 0x39e   :  { %v1996_v1 = vpop.eup %1995 }
 0x39f   :  { %v1104_v21 = vadd.f32 1.0, %v1996_v1 }
 0x3a0   :  { %v1998_v61 = vpop.eup %1997 }
 0x3a1   :  { %v2000_v17 = vpop.eup %1999  ;;  %v1067_v50 = vmul.f32 %v1998_v61, %v1065_v23  ;;  %2001 = vrcp.f32 %v1104_v21  ;;  %vm1072_vm1 = vweird.f32 %v1998_v61  ;;  %vm1110_vm10 = vweird.f32 %v1104_v21 }
 0x3a2   :  { %v1086_v24 = vmul.f32 %v2000_v17, %v1084_v30  ;;  %2003 = vtanh.f32 %v1060_v20  ;;  %vm1091_vm2 = vweird.f32 %v2000_v17  ;;  %vm1073_vm5 = vmor %vm1071_vm3, %vm1072_vm1 }
 0x3a3   :  { %v1068_v32 = vsub.f32 1.0, %v1067_v50  ;;  %vm1092_vm6 = vmor %vm1090_vm4, %vm1091_vm2  ;;  %v1116_v50 = vand.u32 2147483648, %v1104_v21 }
 0x3a4   :  { %v1087_v14 = vsub.f32 1.0, %v1086_v24 }
 0x3a5   :  { %v1069_v38 = vmul.f32 %v1998_v61, %v1068_v32  ;;  %v1117_v32 = vor.u32 1.1754944e-38, %v1116_v50 }
 0x3a6   :  { %v1088_v8 = vmul.f32 %v2000_v17, %v1087_v14 }
 0x3a7   :  { %v2002_v53 = vpop.eup %2001  ;;  %v1070_v6 = vadd.f32 %v1998_v61, %v1069_v38 }
 0x3a8   :  { %v1089_v45 = vadd.f32 %v2000_v17, %v1088_v8  ;;  %v1106_v9 = vmul.f32 %v2002_v53, %v1104_v21  ;;  %v2004_v40 = vpop.eup %2003  ;;  %vm1111_vm9 = vweird.f32 %v2002_v53 }
 0x3a9   :  { %v1074_v39 = vsel %vm1073_vm5, %v1998_v61, %v1070_v6  ;;  %v1114_v61 = vand.u32 2147483647, %v1104_v21  ;;  %vm1112_vm11 = vmor %vm1110_vm10, %vm1111_vm9 }
 0x3aa   :  { %v1079_v46 = vsel %vm1076_vm7, %v1078_v54, %v1074_v39  ;;  %v1093_v5 = vsel %vm1092_vm6, %v2000_v17, %v1089_v45  ;;  %v1107_v22 = vsub.f32 1.0, %v1106_v9 }
 0x3ab   :  { %v1098_v18 = vsel %vm1095_vm8, %v1097_v19, %v1093_v5  ;;  %v1121_v1 = vmul.f32 %v2004_v40, %v1079_v46  ;;  %vm1115_vm12 = vcmp.eq.f32.partialorder %v1114_v61, 8.507059e+37 }
 0x3ac   :  { %v1120_v52 = vmul.f32 %v1098_v18, %v2633_v34  ;;  %v1108_v20 = vmul.f32 %v2002_v53, %v1107_v22 }
 0x3ae   :  { %v2673_v23 = vadd.f32 %v1121_v1, %v1120_v52  ;;  %v1109_v30 = vadd.f32 %v2002_v53, %v1108_v20 }
 0x3b0   :  { %2005 = vtanh.f32 %v2673_v23  ;;  %v1113_v24 = vsel %vm1112_vm11, %v2002_v53, %v1109_v30 }
 0x3b1   :  { %v1118_v14 = vsel %vm1115_vm12, %v1117_v32, %v1113_v24 }
 0x3b6   :  { %v2006_v17 = vpop.eup %2005 }
 0x3b7   :  { %v1124_v10 = vmul.f32 %v2006_v17, %v1118_v14 }
 0x3b9   :  { %v1132_v37 = vpack.c.bf16 %v1124_v10, %v1124_v10 }
 0x3bb   :  { %1141 = vmatmul.bf16.vlgmr.msra.gmra.mxu0 %v1132_v37  ;;  %1154 = vmatmul.bf16.vlgmr.msrb.gmra.mxu1 %v1132_v37 }
 0x3bc   :  { %1167 = vmatmul.bf16.vlgmr.msra.gmra.mxu2 %v1132_v37  ;;  %1180 = vmatmul.bf16.vlgmr.msra.gmra.mxu3 %v1132_v37 }
 0x3bd   :  { %1387 = vmatpush.bf16.msra.mxu0 %v2204_v29  ;;  %1400 = vmatpush.bf16.msrb.mxu1 %v2212_v36  ;;  %v2804_v36 = vld [vmem:[#allocation14_spill] sm:$0xff] }
 0x3be   :  { %1413 = vmatpush.bf16.msra.mxu2 %v2224_v47  ;;  %1426 = vmatpush.bf16.msra.mxu3 %v2206_v35 }
 0x3c1   :  { %1388 = vmatpush.bf16.msra.mxu0 %v2219_v42  ;;  %1401 = vmatpush.bf16.msrb.mxu1 %v2227_v48 }
 0x3c2   :  { %1414 = vmatpush.bf16.msra.mxu2 %v2234_v57  ;;  %1427 = vmatpush.bf16.msra.mxu3 %v2222_v43  ;;  %v2805_v43 = vld [vmem:[#allocation21_spill] sm:$0xff] }
 0x3c5   :  { %1389 = vmatpush.bf16.msra.mxu0 %v2231_v55  ;;  %1402 = vmatpush.bf16.msrb.mxu1 %v2239_v62  ;;  %v2806_v62 = vld [vmem:[#allocation17_spill] sm:$0xff] }
 0x3c6   :  { %1415 = vmatpush.bf16.msra.mxu2 %v2242_v63  ;;  %1428 = vmatpush.bf16.msra.mxu3 %v2236_v58 }
 0x3c9   :  { %1390 = vmatpush.bf16.msra.mxu0 %v2245_v2  ;;  %1403 = vmatpush.bf16.msrb.mxu1 %v2260_v12 }
 0x3ca   :  { %1416 = vmatpush.bf16.msra.mxu2 %v2263_v15  ;;  %1429 = vmatpush.bf16.msra.mxu3 %v2248_v4 }
 0x3cd   :  { %1391 = vmatpush.bf16.msra.mxu0 %v2258_v11  ;;  %1404 = vmatpush.bf16.msrb.mxu1 %v2279_v27 }
 0x3ce   :  { %1417 = vmatpush.bf16.msra.mxu2 %v2282_v31  ;;  %1430 = vmatpush.bf16.msra.mxu3 %v2273_v25 }
 0x3d1   :  { %1392 = vmatpush.bf16.msra.mxu0 %v2276_v26  ;;  %1405 = vmatpush.bf16.msrb.mxu1 %v2291_v44 }
 0x3d2   :  { %1418 = vmatpush.bf16.msra.mxu2 %v2294_v49  ;;  %1431 = vmatpush.bf16.msra.mxu3 %v2285_v33  ;;  %v2807_v49 = vld [vmem:[#allocation16_spill] sm:$0xff] }
 0x3d5   :  { %1393 = vmatpush.bf16.msra.mxu0 %v2288_v41  ;;  %1406 = vmatpush.bf16.msrb.mxu1 %v2322_v7 }
 0x3d6   :  { %1419 = vmatpush.bf16.msra.mxu2 %v2304_v59  ;;  %1432 = vmatpush.bf16.msra.mxu3 %v2297_v51 }
 0x3d9   :  { %1394 = vmatpush.bf16.msra.mxu0 %v2300_v56  ;;  %1407 = vmatpush.bf16.msrb.mxu1 %v2328_v13 }
 0x3da   :  { %1420 = vmatpush.bf16.msra.mxu2 %v2314_v3  ;;  %1433 = vmatpush.bf16.msra.mxu3 %v2307_v60 }
 0x438   :  { %v1142_v29 = vpop.f32.mrf.mxu0  ;;  %v1155_v35 = vpop.f32.mrf.mxu1 }
 0x439   :  { %v1185_v42 = vadd.f32 %v1142_v29, %v2804_v36  ;;  %v1186_v47 = vadd.f32 %v1155_v35, %v2805_v43  ;;  %v2808_v35 = vld [vmem:[#allocation7_spill] sm:$0xff] }
 0x43b   :  { %v1828_v48 = vmul.f32 -1.442695, %v1185_v42  ;;  %v1829_v55 = vmul.f32 -1.442695, %v1186_v47  ;;  %v2809_v42 = vld [vmem:[#allocation24_spill] sm:$0xff] }
 0x43d   :  { %2007 = vpow2.f32 %v1828_v48 }
 0x43e   :  { %2009 = vpow2.f32 %v1829_v55 }
 0x43f   :  { %v1168_v57 = vpop.f32.mrf.mxu2  ;;  %v1181_v58 = vpop.f32.mrf.mxu3 }
 0x440   :  { %v1188_v63 = vadd.f32 %v1181_v58, %v2806_v62  ;;  %v1144_v2 = vpop.f32.mrf.mxu0  ;;  %v1157_v4 = vpop.f32.mrf.mxu1  ;;  %v1187_v51 = vadd.f32 %v1168_v57, %v2807_v49  ;;  %v2810_v58 = vld [vmem:[#allocation20_spill] sm:$0xff] }
 0x442   :  { %v1830_v11 = vmul.f32 -1.442695, %v1188_v63 }
 0x443   :  { %v2008_v12 = vpop.eup %2007 }
 0x444   :  { %v2010_v15 = vpop.eup %2009  ;;  %v1192_v25 = vadd.f32 1.0, %v2008_v12  ;;  %2011 = vpow2.f32 %v1830_v11 }
 0x445   :  { %v1211_v26 = vadd.f32 1.0, %v2010_v15 }
 0x446   :  { %2013 = vrcp.f32 %v1192_v25  ;;  %v1204_v13 = vand.u32 2147483648, %v1192_v25  ;;  %v1202_v38 = vand.u32 2147483647, %v1192_v25  ;;  %vm1198_vm15 = vweird.f32 %v1192_v25 }
 0x447   :  { %2015 = vrcp.f32 %v1211_v26  ;;  %v1170_v27 = vpop.f32.mrf.mxu2  ;;  %v1183_v31 = vpop.f32.mrf.mxu3  ;;  %v1223_v34 = vand.u32 2147483648, %v1211_v26  ;;  %v1221_v8 = vand.u32 2147483647, %v1211_v26  ;;  %vm1217_vm0 = vweird.f32 %v1211_v26 }
 0x448   :  { %v1205_v6 = vor.u32 1.1754944e-38, %v1204_v13  ;;  %vm1203_vm3 = vcmp.eq.f32.partialorder %v1202_v38, 8.507059e+37 }
 0x449   :  { %v1224_v9 = vor.u32 1.1754944e-38, %v1223_v34  ;;  %vm1222_vm4 = vcmp.eq.f32.partialorder %v1221_v8, 8.507059e+37 }
 0x44a   :  { %v2012_v33 = vpop.eup %2011 }
 0x44b   :  { %v1231_v41 = vadd.f32 1.0, %v2012_v33 }
 0x44c   :  { %v2014_v44 = vpop.eup %2013 }
 0x44d   :  { %v2016_v56 = vpop.eup %2015  ;;  %v1194_v59 = vmul.f32 %v2014_v44, %v1192_v25  ;;  %2017 = vrcp.f32 %v1231_v41  ;;  %vm1199_vm13 = vweird.f32 %v2014_v44  ;;  %v1243_v50 = vand.u32 2147483648, %v1231_v41 }
 0x44e   :  { %v1213_v60 = vmul.f32 %v2016_v56, %v1211_v26  ;;  %2019 = vtanh.f32 %v1187_v51  ;;  %vm1218_vm14 = vweird.f32 %v2016_v56  ;;  %vm1200_vm1 = vmor %vm1198_vm15, %vm1199_vm13  ;;  %vm1237_vm6 = vweird.f32 %v1231_v41 }
 0x44f   :  { %v1195_v3 = vsub.f32 1.0, %v1194_v59  ;;  %vm1219_vm2 = vmor %vm1217_vm0, %vm1218_vm14  ;;  %v1241_v61 = vand.u32 2147483647, %v1231_v41  ;;  %v1244_v32 = vor.u32 1.1754944e-38, %v1243_v50 }
 0x450   :  { %v1214_v7 = vsub.f32 1.0, %v1213_v60 }
 0x451   :  { %v1196_v21 = vmul.f32 %v2014_v44, %v1195_v3  ;;  %vm1242_vm8 = vcmp.eq.f32.partialorder %v1241_v61, 8.507059e+37 }
 0x452   :  { %v1215_v16 = vmul.f32 %v2016_v56, %v1214_v7 }
 0x453   :  { %v2018_v28 = vpop.eup %2017  ;;  %v1197_v53 = vadd.f32 %v2014_v44, %v1196_v21 }
 0x454   :  { %v1216_v54 = vadd.f32 %v2016_v56, %v1215_v16  ;;  %v1233_v45 = vmul.f32 %v2018_v28, %v1231_v41  ;;  %v2020_v39 = vpop.eup %2019  ;;  %vm1238_vm5 = vweird.f32 %v2018_v28 }
 0x455   :  { %v1201_v19 = vsel %vm1200_vm1, %v2014_v44, %v1197_v53  ;;  %vm1239_vm7 = vmor %vm1237_vm6, %vm1238_vm5  ;;  %v2811_v44 = vld [vmem:[#allocation19_spill] sm:$0xff] }
 0x456   :  { %v1206_v40 = vsel %vm1203_vm3, %v1205_v6, %v1201_v19  ;;  %v1220_v46 = vsel %vm1219_vm2, %v2016_v56, %v1216_v54  ;;  %v1234_v5 = vsub.f32 1.0, %v1233_v45 }
 0x457   :  { %v1225_v22 = vsel %vm1222_vm4, %v1224_v9, %v1220_v46  ;;  %v1248_v18 = vmul.f32 %v2020_v39, %v1206_v40 }
 0x458   :  { %v1247_v1 = vmul.f32 %v1225_v22, %v2673_v23  ;;  %v1235_v52 = vmul.f32 %v2018_v28, %v1234_v5 }
 0x45a   :  { %v2713_v20 = vadd.f32 %v1248_v18, %v1247_v1  ;;  %v1236_v30 = vadd.f32 %v2018_v28, %v1235_v52 }
 0x45c   :  { %2021 = vtanh.f32 %v2713_v20  ;;  %v1240_v24 = vsel %vm1239_vm7, %v2018_v28, %v1236_v30 }
 0x45d   :  { %v1245_v14 = vsel %vm1242_vm8, %v1244_v32, %v1240_v24 }
 0x462   :  { %v2022_v17 = vpop.eup %2021 }
 0x463   :  { %v1251_v10 = vmul.f32 %v2022_v17, %v1245_v14 }
 0x465   :  { %v1259_v37 = vpack.c.bf16 %v1251_v10, %v1251_v10 }
 0x467   :  { %1268 = vmatmul.bf16.vlgmr.msrb.gmra.mxu0 %v1259_v37  ;;  %1281 = vmatmul.bf16.vlgmr.msra.gmra.mxu1 %v1259_v37 }
 0x468   :  { %1294 = vmatmul.bf16.vlgmr.msrb.gmra.mxu2 %v1259_v37  ;;  %1307 = vmatmul.bf16.vlgmr.msrb.gmra.mxu3 %v1259_v37 }
 0x4e4   :  { %v1269_v23 = vpop.f32.mrf.mxu0  ;;  %v1282_v29 = vpop.f32.mrf.mxu1 }
 0x4e5   :  { %v1312_v36 = vadd.f32 %v1269_v23, %v2808_v35  ;;  %v1313_v43 = vadd.f32 %v1282_v29, %v2809_v42  ;;  %v1919_v23 = vld [vmem:[%s2772_s6 + $0x30] sm:$0xff]  ;;  %v1918_v29 = vld [vmem:[%s2772_s6 + $0x28] sm:$0xff]  ;;  %v1917_v35 = vld [vmem:[%s2772_s6 + $0x20] sm:$0xff] }
 0x4e6   :  { %v2812_v42 = vld [vmem:[#allocation6_spill] sm:$0xff] }
 0x4e7   :  { %v1831_v47 = vmul.f32 -1.442695, %v1312_v36  ;;  %v1832_v48 = vmul.f32 -1.442695, %v1313_v43  ;;  %v1916_v36 = vld [vmem:[%s2772_s6 + $0x18] sm:$0xff]  ;;  %v2813_v43 = vld [vmem:[#allocation8_spill] sm:$0xff] }
 0x4e9   :  { %2023 = vpow2.f32 %v1831_v47  ;;  %v175_v47 = vadd.f32 %v2813_v43, %v2812_v42 }
 0x4ea   :  { %2025 = vpow2.f32 %v1832_v48 }
 0x4eb   :  { %v1295_v55 = vpop.f32.mrf.mxu2  ;;  %v1308_v57 = vpop.f32.mrf.mxu3 }
 0x4ec   :  { %v1315_v62 = vadd.f32 %v1308_v57, %v2810_v58  ;;  %v1271_v63 = vpop.f32.mrf.mxu0  ;;  %v1284_v2 = vpop.f32.mrf.mxu1  ;;  %v1314_v49 = vadd.f32 %v1295_v55, %v2811_v44 }
 0x4ee   :  { %v1833_v4 = vmul.f32 -1.442695, %v1315_v62  ;;  %v1915_v62 = vld [vmem:[%s2772_s6 + $0x10] sm:$0xff] }
 0x4ef   :  { %v2024_v11 = vpop.eup %2023 }
 0x4f0   :  { %v2026_v12 = vpop.eup %2025  ;;  %v1319_v15 = vadd.f32 1.0, %v2024_v11  ;;  %2027 = vpow2.f32 %v1833_v4  ;;  %v1914_v4 = vld [vmem:[%s2772_s6 + $0x8] sm:$0xff] }
 0x4f1   :  { %v1338_v25 = vadd.f32 1.0, %v2026_v12 }
 0x4f2   :  { %2029 = vrcp.f32 %v1319_v15  ;;  %v1331_v7 = vand.u32 2147483648, %v1319_v15  ;;  %v1329_v21 = vand.u32 2147483647, %v1319_v15  ;;  %vm1325_vm11 = vweird.f32 %v1319_v15 }
 0x4f3   :  { %2031 = vrcp.f32 %v1338_v25  ;;  %v1297_v26 = vpop.f32.mrf.mxu2  ;;  %v1310_v27 = vpop.f32.mrf.mxu3  ;;  %v1350_v13 = vand.u32 2147483648, %v1338_v25  ;;  %v1348_v16 = vand.u32 2147483647, %v1338_v25  ;;  %vm1344_vm12 = vweird.f32 %v1338_v25 }
 0x4f4   :  { %v1332_v53 = vor.u32 1.1754944e-38, %v1331_v7  ;;  %vm1330_vm15 = vcmp.eq.f32.partialorder %v1329_v21, 8.507059e+37  ;;  %v2815_v7 = vld [vmem:[#allocation22_spill] sm:$0xff] }
 0x4f5   :  { %v1351_v45 = vor.u32 1.1754944e-38, %v1350_v13  ;;  %vm1349_vm0 = vcmp.eq.f32.partialorder %v1348_v16, 8.507059e+37 }
 0x4f6   :  { %v2028_v31 = vpop.eup %2027 }
 0x4f7   :  { %v1358_v33 = vadd.f32 1.0, %v2028_v31 }
 0x4f8   :  { %v2030_v41 = vpop.eup %2029 }
 0x4f9   :  { %v2032_v51 = vpop.eup %2031  ;;  %v1321_v56 = vmul.f32 %v2030_v41, %v1319_v15  ;;  %2033 = vrcp.f32 %v1358_v33  ;;  %vm1326_vm9 = vweird.f32 %v2030_v41  ;;  %v1370_v50 = vand.u32 2147483648, %v1358_v33  ;;  %v2814_v15 = vld [vmem:[#allocation23_spill] sm:$0xff] }
 0x4fa   :  { %v1340_v59 = vmul.f32 %v2032_v51, %v1338_v25  ;;  %2035 = vtanh.f32 %v1314_v49  ;;  %vm1345_vm10 = vweird.f32 %v2032_v51  ;;  %vm1327_vm13 = vmor %vm1325_vm11, %vm1326_vm9  ;;  %vm1364_vm2 = vweird.f32 %v1358_v33 }
 0x4fb   :  { %v1322_v60 = vsub.f32 1.0, %v1321_v56  ;;  %vm1346_vm14 = vmor %vm1344_vm12, %vm1345_vm10  ;;  %v1368_v61 = vand.u32 2147483647, %v1358_v33  ;;  %v1371_v32 = vor.u32 1.1754944e-38, %v1370_v50 }
 0x4fc   :  { %v1341_v3 = vsub.f32 1.0, %v1340_v59 }
 0x4fd   :  { %v1323_v34 = vmul.f32 %v2030_v41, %v1322_v60  ;;  %vm1369_vm4 = vcmp.eq.f32.partialorder %v1368_v61, 8.507059e+37 }
 0x4fe   :  { %v1342_v38 = vmul.f32 %v2032_v51, %v1341_v3 }
 0x4ff   :  { %v2034_v8 = vpop.eup %2033  ;;  %v1324_v28 = vadd.f32 %v2030_v41, %v1323_v34 }
 0x500   :  { %v1343_v6 = vadd.f32 %v2032_v51, %v1342_v38  ;;  %v1360_v54 = vmul.f32 %v2034_v8, %v1358_v33  ;;  %v2036_v19 = vpop.eup %2035  ;;  %vm1365_vm1 = vweird.f32 %v2034_v8 }
 0x501   :  { %v1328_v9 = vsel %vm1327_vm13, %v2030_v41, %v1324_v28  ;;  %vm1366_vm3 = vmor %vm1364_vm2, %vm1365_vm1 }
 0x502   :  { %v1333_v39 = vsel %vm1330_vm15, %v1332_v53, %v1328_v9  ;;  %v1347_v40 = vsel %vm1346_vm14, %v2032_v51, %v1343_v6  ;;  %v1361_v46 = vsub.f32 1.0, %v1360_v54 }
 0x503   :  { %v1352_v5 = vsel %vm1349_vm0, %v1351_v45, %v1347_v40  ;;  %v1375_v22 = vmul.f32 %v2036_v19, %v1333_v39 }
 0x504   :  { %v1374_v18 = vmul.f32 %v1352_v5, %v2713_v20  ;;  %v1362_v1 = vmul.f32 %v2034_v8, %v1361_v46  ;;  %v1920_v20 = vld [vmem:[%s2772_s6 + $0x38] sm:$0xff] }
 0x505   :  { %1577 = vmatpush.bf16.msrb.mxu0 %v1920_v20 }
 0x506   :  { %v2721_v52 = vadd.f32 %v1375_v22, %v1374_v18  ;;  %v1363_v30 = vadd.f32 %v2034_v8, %v1362_v1 }
 0x508   :  { %2037 = vtanh.f32 %v2721_v52  ;;  %v1367_v24 = vsel %vm1366_vm3, %v2034_v8, %v1363_v30 }
 0x509   :  { %v1372_v14 = vsel %vm1369_vm4, %v1371_v32, %v1367_v24  ;;  %1578 = vmatpush.bf16.msrb.mxu0 %v1919_v23 }
 0x50d   :  { %1579 = vmatpush.bf16.msrb.mxu0 %v1918_v29 }
 0x50e   :  { %v2038_v17 = vpop.eup %2037 }
 0x50f   :  { %v1378_v10 = vmul.f32 %v2038_v17, %v1372_v14 }
 0x511   :  { %v1386_v37 = vpack.c.bf16 %v1378_v10, %v1378_v10  ;;  %1580 = vmatpush.bf16.msrb.mxu0 %v1917_v35 }
 0x513   :  { %1395 = vmatmul.bf16.vlgmr.msra.gmra.mxu0 %v1386_v37  ;;  %1408 = vmatmul.bf16.vlgmr.msrb.gmra.mxu1 %v1386_v37 }
 0x514   :  { %1421 = vmatmul.bf16.vlgmr.msra.gmra.mxu2 %v1386_v37  ;;  %1434 = vmatmul.bf16.vlgmr.msra.gmra.mxu3 %v1386_v37 }
 0x515   :  { %1581 = vmatpush.bf16.msrb.mxu0 %v1916_v36 }
 0x519   :  { %1582 = vmatpush.bf16.msrb.mxu0 %v1915_v62 }
 0x51d   :  { %1583 = vmatpush.bf16.msrb.mxu0 %v1914_v4 }
 0x590   :  { %v1396_v48 = vpop.f32.mrf.mxu0  ;;  %v1409_v55 = vpop.f32.mrf.mxu1 }
 0x591   :  { %v1439_v57 = vadd.f32 %v1396_v48, %v175_v47  ;;  %v1440_v58 = vadd.f32 %v1409_v55, %v2506_v0  ;;  %v1913_v0 = vld [vmem:[%s2772_s6] sm:$0xff] }
 0x592   :  { %1584 = vmatpush.bf16.msrb.mxu0 %v1913_v0  ;;  %v1926_v47 = vld [vmem:[%s2773_s7] ss:$0 sm:$0xff] }
 0x593   :  { %v1834_v63 = vmul.f32 -1.442695, %v1439_v57  ;;  %v1835_v2 = vmul.f32 -1.442695, %v1440_v58 }
 0x595   :  { %2039 = vpow2.f32 %v1834_v63 }
 0x596   :  { %2041 = vpow2.f32 %v1835_v2 }
 0x597   :  { %v1422_v11 = vpop.f32.mrf.mxu2  ;;  %v1435_v12 = vpop.f32.mrf.mxu3 }
 0x598   :  { %v1442_v25 = vadd.f32 %v1435_v12, %v2814_v15  ;;  %v1398_v26 = vpop.f32.mrf.mxu0  ;;  %v1411_v27 = vpop.f32.mrf.mxu1  ;;  %v1441_v13 = vadd.f32 %v1422_v11, %v2815_v7 }
 0x59a   :  { %v1836_v31 = vmul.f32 -1.442695, %v1442_v25 }
 0x59b   :  { %v2040_v33 = vpop.eup %2039 }
 0x59c   :  { %v2042_v41 = vpop.eup %2041  ;;  %v1446_v44 = vadd.f32 1.0, %v2040_v33  ;;  %2043 = vpow2.f32 %v1836_v31 }
 0x59d   :  { %v1465_v49 = vadd.f32 1.0, %v2042_v41 }
 0x59e   :  { %2045 = vrcp.f32 %v1446_v44  ;;  %v1458_v28 = vand.u32 2147483648, %v1446_v44  ;;  %v1456_v54 = vand.u32 2147483647, %v1446_v44  ;;  %vm1452_vm7 = vweird.f32 %v1446_v44 }
 0x59f   :  { %2047 = vrcp.f32 %v1465_v49  ;;  %v1424_v51 = vpop.f32.mrf.mxu2  ;;  %v1437_v56 = vpop.f32.mrf.mxu3  ;;  %v1477_v53 = vand.u32 2147483648, %v1465_v49  ;;  %v1475_v9 = vand.u32 2147483647, %v1465_v49  ;;  %vm1471_vm8 = vweird.f32 %v1465_v49 }
 0x5a0   :  { %v1459_v40 = vor.u32 1.1754944e-38, %v1458_v28  ;;  %vm1457_vm11 = vcmp.eq.f32.partialorder %v1456_v54, 8.507059e+37 }
 0x5a1   :  { %v1478_v22 = vor.u32 1.1754944e-38, %v1477_v53  ;;  %vm1476_vm12 = vcmp.eq.f32.partialorder %v1475_v9, 8.507059e+37 }
 0x5a2   :  { %v2044_v59 = vpop.eup %2043 }
 0x5a3   :  { %v1485_v60 = vadd.f32 1.0, %v2044_v59 }
 0x5a4   :  { %v2046_v3 = vpop.eup %2045 }
 0x5a5   :  { %v2048_v34 = vpop.eup %2047  ;;  %v1448_v21 = vmul.f32 %v2046_v3, %v1446_v44  ;;  %2049 = vrcp.f32 %v1485_v60  ;;  %vm1453_vm5 = vweird.f32 %v2046_v3  ;;  %v1497_v20 = vand.u32 2147483648, %v1485_v60 }
 0x5a6   :  { %v1467_v38 = vmul.f32 %v2048_v34, %v1465_v49  ;;  %2051 = vtanh.f32 %v1441_v13  ;;  %vm1472_vm6 = vweird.f32 %v2048_v34  ;;  %vm1454_vm9 = vmor %vm1452_vm7, %vm1453_vm5  ;;  %vm1491_vm14 = vweird.f32 %v1485_v60 }
 0x5a7   :  { %v1449_v16 = vsub.f32 1.0, %v1448_v21  ;;  %vm1473_vm10 = vmor %vm1471_vm8, %vm1472_vm6  ;;  %v1495_v23 = vand.u32 2147483647, %v1485_v60  ;;  %v1498_v35 = vor.u32 1.1754944e-38, %v1497_v20 }
 0x5a8   :  { %v1468_v8 = vsub.f32 1.0, %v1467_v38 }
 0x5a9   :  { %v1450_v6 = vmul.f32 %v2046_v3, %v1449_v16  ;;  %vm1496_vm0 = vcmp.eq.f32.partialorder %v1495_v23, 8.507059e+37 }
 0x5aa   :  { %v1469_v45 = vmul.f32 %v2048_v34, %v1468_v8 }
 0x5ab   :  { %v2050_v19 = vpop.eup %2049  ;;  %v1451_v39 = vadd.f32 %v2046_v3, %v1450_v6 }
 0x5ac   :  { %v1470_v46 = vadd.f32 %v2048_v34, %v1469_v45  ;;  %v1487_v5 = vmul.f32 %v2050_v19, %v1485_v60  ;;  %v2052_v1 = vpop.eup %2051  ;;  %vm1492_vm13 = vweird.f32 %v2050_v19 }
 0x5ad   :  { %v1455_v18 = vsel %vm1454_vm9, %v2046_v3, %v1451_v39  ;;  %vm1493_vm15 = vmor %vm1491_vm14, %vm1492_vm13 }
 0x5ae   :  { %v1460_v30 = vsel %vm1457_vm11, %v1459_v40, %v1455_v18  ;;  %v1474_v50 = vsel %vm1473_vm10, %v2048_v34, %v1470_v46  ;;  %v1488_v61 = vsub.f32 1.0, %v1487_v5 }
 0x5af   :  { %v1479_v24 = vsel %vm1476_vm12, %v1478_v22, %v1474_v50  ;;  %v1502_v32 = vmul.f32 %v2052_v1, %v1460_v30 }
 0x5b0   :  { %v1501_v17 = vmul.f32 %v1479_v24, %v2721_v52  ;;  %v1489_v14 = vmul.f32 %v2050_v19, %v1488_v61 }
 0x5b2   :  { %v1503_v10 = vadd.f32 %v1502_v32, %v1501_v17  ;;  %v1490_v37 = vadd.f32 %v2050_v19, %v1489_v14 }
 0x5b4   :  { %2053 = vtanh.f32 %v1503_v10  ;;  %1507 = vst [vmem:[%s2776_s10] sm:$0xff] %v1503_v10  ;;  %v1494_v29 = vsel %vm1493_vm15, %v2050_v19, %v1490_v37 }
 0x5b5   :  { %v1499_v42 = vsel %vm1496_vm0, %v1498_v35, %v1494_v29 }
 0x5ba   :  { %v2054_v36 = vpop.eup %2053 }
 0x5bb   :  { %v1505_v43 = vmul.f32 %v2054_v36, %v1499_v42 }
 0x5bd   :  { %1506 = vst [vmem:[%s2775_s9] sm:$0xff] %v1505_v43  ;;  %v1508_v52 = vpack.c.bf16 %v1505_v43, %v1505_v43 }
 0x5bf   :  { %1585 = vmatmul.bf16.vlgmr.msrb.gmra.mxu0 %v1508_v52 }
 0x63c   :  { %v1586_v48 = vpop.f32.mrf.mxu0 }
 0x63d   :  { %v1587_v55 = vadd.f32 %v1926_v47, %v1586_v48 }
 0x63f   :  { %1590 = vmax.xlane.f32.xlu0 %v1587_v55 }
 0x644   :  { %v1588_v57 = vpop.f32.mrf.mxu0 }
 0x6b2   :  { %v1591_v58 = vpop.xlane.xlu0 %1590 }
 0x6b3   :  { %v1592_v62 = vsub.f32 %v1587_v55, %v1591_v58 }
 0x6b5   :  { %v1593_v63 = vmul.f32 1.442695, %v1592_v62 }
 0x6b7   :  { %2055 = vpow2.f32 %v1593_v63 }
 0x6bd   :  { %v2056_v2 = vpop.eup %2055 }
 0x6be   :  { %1595 = vadd.xlane.f32.xlu0 %v2056_v2 }
 0x731   :  { %v1596_v4 = vpop.xlane.xlu0 %1595 }
 0x732   :  { %2057 = vlog2.f32 %v1596_v4 }
 0x738   :  { %v2058_v11 = vpop.eup %2057 }
 0x739   :  { %v1598_v12 = vmul.f32 0.6931472, %v2058_v11 }
 0x73b   :  { %v1599_v15 = vsub.f32 %v1592_v62, %v1598_v12 }
 0x73d   :  { %1600 = vst [vmem:[%s2774_s8] sm:$0xff] %v1599_v15 }
 0x73e   :  { %1613 = vsyncpa [#allocation4], 1 }

</bundles_post_ra>
